<compile_context>
chip_gen: v5e
topology: v5e:2x2
jax: 0.10.0
libtpu: 0.0.40
codegen_flags: <defaults>
</compile_context>

<pallas_src>
import math

import jax
import jax.numpy as jnp
import numpy as np
from jax.experimental import pallas as pl
from jax.experimental.pallas import tpu as pltpu


# ----------------------------- Pallas kernel -------------------------------
def _conv_bn_relu(act, w_ref, b_ref, idx_ref):
    """One conv3x3/stride-2/pad-1 + folded-BN + ReLU layer, fully in-kernel.

    act     : (Ci, M_in)  f32 activation (channels on sublanes, N*H*W on lanes)
    w_ref   : (Co, 9*Ci)  bf16 folded conv weight (BN scale already applied)
    b_ref   : (Co, 1)     f32 folded bias
    idx_ref : (9, M_out)  int32 gather table: flat source column per tap,
                          -1 for zero-padding positions
    returns : (Co, M_out) f32
    """
    m_in = act.shape[1]
    n_tap, m_out = idx_ref.shape

    act_bf = act.astype(jnp.bfloat16)
    idx = idx_ref[...]                                            # (9, M_out) i32
    row = jax.lax.broadcasted_iota(jnp.int32, (m_in, m_out), 0)   # source col ids

    # In-kernel im2col: exact one-hot gather matmul per tap (MXU), then stack
    # the 9 gathered (Ci, M_out) blocks into the (9*Ci, M_out) patch matrix.
    taps = []
    for t in range(n_tap):
        onehot = (row == idx[t:t + 1, :]).astype(jnp.bfloat16)    # (M_in, M_out)
        taps.append(jnp.dot(act_bf, onehot,
                            preferred_element_type=jnp.float32))  # (Ci, M_out)
    patches = jnp.concatenate(taps, axis=0).astype(jnp.bfloat16)  # (9*Ci, M_out)

    y = jnp.dot(w_ref[...], patches, preferred_element_type=jnp.float32)
    return jnp.maximum(y + b_ref[...], 0.0)                       # f32 epilogue


def encoder_kernel(p1_ref, w1_ref, b1_ref,
                   w2_ref, b2_ref, i2_ref,
                   w3_ref, b3_ref, i3_ref,
                   w4_ref, b4_ref, i4_ref,
                   o_ref):
    # Layer 1: patches prebuilt in glue as (9, M1) bf16 (Ci=1), M1 lane-dense.
    y1 = jnp.dot(w1_ref[...], p1_ref[...], preferred_element_type=jnp.float32)
    act = jnp.maximum(y1 + b1_ref[...], 0.0)          # (16, M1) f32

    # Layers 2-4: activations stay on-chip; im2col happens in-kernel.
    act = _conv_bn_relu(act, w2_ref, b2_ref, i2_ref)  # (16, M2)
    act = _conv_bn_relu(act, w3_ref, b3_ref, i3_ref)  # (8,  M3)
    act = _conv_bn_relu(act, w4_ref, b4_ref, i4_ref)  # (8,  M4)

    o_ref[...] = act


# --------------------------- host-side helpers ------------------------------
def _down(s):
    return (s - 1) // 2 + 1                            # conv3x3, stride 2, pad 1


def _gather_indices(n, h_in, w_in):
    """Static (9, N*Ho*Wo) int32 table: flat source column of the (C, N*H*W)
    activation feeding each output column, per 3x3 tap; -1 = zero padding."""
    h_out, w_out = _down(h_in), _down(w_in)
    b = np.arange(n)[:, None, None]
    ho = np.arange(h_out)[None, :, None]
    wo = np.arange(w_out)[None, None, :]
    idx = np.full((9, n * h_out * w_out), -1, dtype=np.int32)
    for dh in range(3):
        for dw in range(3):
            hi = 2 * ho - 1 + dh                       # input row (pad=1, stride=2)
            wi = 2 * wo - 1 + dw
            valid = (hi >= 0) & (hi < h_in) & (wi >= 0) & (wi < w_in)
            src = (b * h_in + hi) * w_in + wi
            tap = np.where(valid, src, -1)
            idx[dh * 3 + dw] = np.broadcast_to(
                tap, (n, h_out, w_out)).reshape(-1).astype(np.int32)
    return jnp.asarray(idx)


def _fold_layer(p, eps=1e-5):
    """Fold conv bias + eval-mode BN into a bf16 (Co, 9*Ci) weight + f32 bias."""
    co, ci, kh, kw = p["w"].shape
    s = p["gamma"] / jnp.sqrt(p["var"] + eps)
    bias = (p["b"] - p["mean"]) * s + p["beta"]
    # (Co, Ci, kh, kw) -> (Co, kh, kw, Ci) -> (Co, 9*Ci):
    # K index = (dh*3 + dw)*Ci + c, matching the tap-major patch layout.
    w = jnp.transpose(p["w"], (0, 2, 3, 1)).reshape(co, kh * kw * ci)
    w = w * s[:, None]                                 # fold BN scale into weight
    return w.astype(jnp.bfloat16), bias.reshape(co, 1).astype(jnp.float32)


def encoder_forward(x_nchw, params):
    """x: (N, 1, H, W) f32 -> (N, 8, H/16, W/16) f32 (NCHW, eval-mode BN)."""
    N, ci0, H, W = x_nchw.shape
    assert ci0 == 1

    h1, w1s = _down(H), _down(W)
    h2, w2s = _down(h1), _down(w1s)
    h3, w3s = _down(h2), _down(w2s)
    h4, w4s = _down(h3), _down(w3s)

    # Layer-1 im2col in glue (one-time, ~KB): lane-dense (9, N*h1*w1) patches.
    xsq = x_nchw[:, 0, :, :]
    xp = jnp.pad(xsq, ((0, 0), (1, 1), (1, 1)))
    taps = [xp[:, dh:dh + 2 * h1:2, dw:dw + 2 * w1s:2]
            for dh in range(3) for dw in range(3)]
    p1 = jnp.stack(taps, axis=0).reshape(9, N * h1 * w1s).astype(jnp.bfloat16)

    w1, b1 = _fold_layer(params[0])
    w2, b2 = _fold_layer(params[1])
    w3, b3 = _fold_layer(params[2])
    w4, b4 = _fold_layer(params[3])

    i2 = _gather_indices(N, h1, w1s)
    i3 = _gather_indices(N, h2, w2s)
    i4 = _gather_indices(N, h3, w3s)

    operands = [p1, w1, b1, w2, b2, i2, w3, b3, i3, w4, b4, i4]
    in_specs = [pl.BlockSpec(a.shape, lambda i: (0, 0)) for a in operands]

    co_last = w4.shape[0]
    m_last = N * h4 * w4s
    out = pl.pallas_call(
        encoder_kernel,
        out_shape=jax.ShapeDtypeStruct((co_last, m_last), jnp.float32),
        grid=(1,),
        in_specs=in_specs,
        out_specs=pl.BlockSpec((co_last, m_last), lambda i: (0, 0)),
        compiler_params=pltpu.CompilerParams(
            dimension_semantics=("arbitrary",)),
    )(*operands)

    # (Co, N*h4*w4) -> (N, Co, h4, w4)
    return jnp.transpose(out.reshape(co_last, N, h4, w4s), (1, 0, 2, 3))


# --------------------------- parameters & reference -------------------------
def init_block_params(key, ci, co, ks=3):
    """Deterministic synthetic params matching PyTorch layer shapes."""
    k1, k2, k3, k4, k5, k6 = jax.random.split(key, 6)
    fan_in = ci * ks * ks
    bound = 1.0 / math.sqrt(fan_in)
    return dict(
        w=jax.random.uniform(k1, (co, ci, ks, ks), jnp.float32, -bound, bound),
        b=jax.random.uniform(k2, (co,), jnp.float32, -bound, bound),
        gamma=jax.random.uniform(k3, (co,), jnp.float32, 0.5, 1.5),
        beta=jax.random.uniform(k4, (co,), jnp.float32, -0.1, 0.1),
        mean=jax.random.normal(k5, (co,), jnp.float32) * 0.1,
        var=jax.random.uniform(k6, (co,), jnp.float32, 0.5, 1.5),
    )


def encoder_reference(x, params, eps=1e-5):
    """Pure-JAX f32 reference (Conv2d + eval-mode BN + ReLU) for validation."""
    for p in params:
        x = jax.lax.conv_general_dilated(
            x, p["w"], window_strides=(2, 2), padding=((1, 1), (1, 1)),
            dimension_numbers=("NCHW", "OIHW", "NCHW"))
        x = x + p["b"].reshape(1, -1, 1, 1)
        s = (p["gamma"] / jnp.sqrt(p["var"] + eps)).reshape(1, -1, 1, 1)
        x = (x - p["mean"].reshape(1, -1, 1, 1)) * s + p["beta"].reshape(1, -1, 1, 1)
        x = jnp.maximum(x, 0.0)
    return x


# --------------------------------- main -------------------------------------
if __name__ == "__main__":
    root = jax.random.PRNGKey(0)
    k_in, k1, k2, k3, k4 = jax.random.split(root, 5)

    layer_defs = [(1, 16), (16, 16), (16, 8), (8, 8)]
    params = [init_block_params(k, ci, co)
              for k, (ci, co) in zip([k1, k2, k3, k4], layer_defs)]

    # Input: batch=2, 1 channel, 16x16 spatial (NCHW, matching the module).
    x = jax.random.normal(k_in, (2, 1, 16, 16), dtype=jnp.float32)

    out = jax.jit(encoder_forward)(x, params)
    out = jax.block_until_ready(out)

    assert out.shape == (2, 8, 1, 1), out.shape
    assert bool(jnp.all(out >= 0.0))          # ReLU output

    # Validate against a pure-JAX f32 reference (bf16 MXU operands -> loose tol).
    ref = encoder_reference(x, params)
    np.testing.assert_allclose(np.asarray(out), np.asarray(ref),
                               rtol=5e-2, atol=5e-2)
    print("KERNEL_OK")
</pallas_src>

<mosaic_0001>
module attributes {stable_mosaic.version = 11 : i64} {
  func.func @encoder_kernel(%arg0: i32, %arg1: memref<9x128xbf16, #tpu.memory_space<vmem>>, %arg2: memref<16x9xbf16, #tpu.memory_space<vmem>>, %arg3: memref<16x1xf32, #tpu.memory_space<vmem>>, %arg4: memref<16x144xbf16, #tpu.memory_space<vmem>>, %arg5: memref<16x1xf32, #tpu.memory_space<vmem>>, %arg6: memref<9x32xi32, #tpu.memory_space<vmem>>, %arg7: memref<8x144xbf16, #tpu.memory_space<vmem>>, %arg8: memref<8x1xf32, #tpu.memory_space<vmem>>, %arg9: memref<9x8xi32, #tpu.memory_space<vmem>>, %arg10: memref<8x72xbf16, #tpu.memory_space<vmem>>, %arg11: memref<8x1xf32, #tpu.memory_space<vmem>>, %arg12: memref<9x2xi32, #tpu.memory_space<vmem>>, %arg13: memref<8x2xf32, #tpu.memory_space<vmem>>) attributes {dimension_semantics = [#tpu.dimension_semantics<arbitrary>], iteration_bounds = array<i64: 1>, scalar_prefetch = 0 : i64, scratch_operands = 0 : i64, tpu.core_type = #tpu.core_type<tc>, window_params = [{pipeline_mode = #tpu.pipeline_mode<synchronous>, transform_indices = @transform_0, window_bounds = array<i64: 9, 128>}, {pipeline_mode = #tpu.pipeline_mode<synchronous>, transform_indices = @transform_1, window_bounds = array<i64: 16, 9>}, {pipeline_mode = #tpu.pipeline_mode<synchronous>, transform_indices = @transform_2, window_bounds = array<i64: 16, 1>}, {pipeline_mode = #tpu.pipeline_mode<synchronous>, transform_indices = @transform_3, window_bounds = array<i64: 16, 144>}, {pipeline_mode = #tpu.pipeline_mode<synchronous>, transform_indices = @transform_4, window_bounds = array<i64: 16, 1>}, {pipeline_mode = #tpu.pipeline_mode<synchronous>, transform_indices = @transform_5, window_bounds = array<i64: 9, 32>}, {pipeline_mode = #tpu.pipeline_mode<synchronous>, transform_indices = @transform_6, window_bounds = array<i64: 8, 144>}, {pipeline_mode = #tpu.pipeline_mode<synchronous>, transform_indices = @transform_7, window_bounds = array<i64: 8, 1>}, {pipeline_mode = #tpu.pipeline_mode<synchronous>, transform_indices = @transform_8, window_bounds = array<i64: 9, 8>}, {pipeline_mode = #tpu.pipeline_mode<synchronous>, transform_indices = @transform_9, window_bounds = array<i64: 8, 72>}, {pipeline_mode = #tpu.pipeline_mode<synchronous>, transform_indices = @transform_10, window_bounds = array<i64: 8, 1>}, {pipeline_mode = #tpu.pipeline_mode<synchronous>, transform_indices = @transform_11, window_bounds = array<i64: 9, 2>}, {pipeline_mode = #tpu.pipeline_mode<synchronous>, transform_indices = @transform_12, window_bounds = array<i64: 8, 2>}]} {
    %c0 = arith.constant 0 : index
    %c0_0 = arith.constant 0 : index
    %0 = vector.load %arg2[%c0, %c0_0] : memref<16x9xbf16, #tpu.memory_space<vmem>>, vector<16x9xbf16>
    %c0_1 = arith.constant 0 : index
    %c0_2 = arith.constant 0 : index
    %1 = vector.load %arg1[%c0_1, %c0_2] : memref<9x128xbf16, #tpu.memory_space<vmem>>, vector<9x128xbf16>
    %cst = arith.constant dense<0.000000e+00> : vector<16x128xf32>
    %2 = tpu.matmul %0, %1, %cst {dimension_numbers = #tpu.dot_dimension_numbers<[1], [0], [0], [1], [0, 0, 1, 1], [], []>} : vector<16x9xbf16>, vector<9x128xbf16>, vector<16x128xf32> -> vector<16x128xf32>
    %c0_3 = arith.constant 0 : index
    %c0_4 = arith.constant 0 : index
    %3 = vector.load %arg3[%c0_3, %c0_4] : memref<16x1xf32, #tpu.memory_space<vmem>>, vector<16x1xf32>
    %4 = vector.broadcast %3 : vector<16x1xf32> to vector<16x128xf32>
    %5 = arith.addf %2, %4 : vector<16x128xf32>
    %cst_5 = arith.constant 0.000000e+00 : f32
    %6 = vector.broadcast %cst_5 : f32 to vector<16x128xf32>
    %7 = arith.maximumf %5, %6 : vector<16x128xf32>
    %8 = arith.truncf %7 : vector<16x128xf32> to vector<16x128xbf16>
    %c0_6 = arith.constant 0 : index
    %c0_7 = arith.constant 0 : index
    %9 = vector.load %arg6[%c0_6, %c0_7] : memref<9x32xi32, #tpu.memory_space<vmem>>, vector<9x32xi32>
    %10 = tpu.iota {dimensions = array<i32: 0>} : vector<128x32xi32>
    %11 = vector.extract_strided_slice %9 {offsets = [0, 0], sizes = [1, 32], strides = [1, 1]} : vector<9x32xi32> to vector<1x32xi32>
    %12 = vector.broadcast %11 : vector<1x32xi32> to vector<128x32xi32>
    %13 = arith.cmpi eq, %10, %12 : vector<128x32xi32>
    %14 = arith.extui %13 : vector<128x32xi1> to vector<128x32xi32>
    %15 = arith.sitofp %14 : vector<128x32xi32> to vector<128x32xf32>
    %16 = arith.truncf %15 : vector<128x32xf32> to vector<128x32xbf16>
    %cst_8 = arith.constant dense<0.000000e+00> : vector<16x32xf32>
    %17 = tpu.matmul %8, %16, %cst_8 {dimension_numbers = #tpu.dot_dimension_numbers<[1], [0], [0], [1], [0, 0, 1, 1], [], []>} : vector<16x128xbf16>, vector<128x32xbf16>, vector<16x32xf32> -> vector<16x32xf32>
    %18 = vector.extract_strided_slice %9 {offsets = [1, 0], sizes = [1, 32], strides = [1, 1]} : vector<9x32xi32> to vector<1x32xi32>
    %19 = vector.broadcast %18 : vector<1x32xi32> to vector<128x32xi32>
    %20 = arith.cmpi eq, %10, %19 : vector<128x32xi32>
    %21 = arith.extui %20 : vector<128x32xi1> to vector<128x32xi32>
    %22 = arith.sitofp %21 : vector<128x32xi32> to vector<128x32xf32>
    %23 = arith.truncf %22 : vector<128x32xf32> to vector<128x32xbf16>
    %cst_9 = arith.constant dense<0.000000e+00> : vector<16x32xf32>
    %24 = tpu.matmul %8, %23, %cst_9 {dimension_numbers = #tpu.dot_dimension_numbers<[1], [0], [0], [1], [0, 0, 1, 1], [], []>} : vector<16x128xbf16>, vector<128x32xbf16>, vector<16x32xf32> -> vector<16x32xf32>
    %25 = vector.extract_strided_slice %9 {offsets = [2, 0], sizes = [1, 32], strides = [1, 1]} : vector<9x32xi32> to vector<1x32xi32>
    %26 = vector.broadcast %25 : vector<1x32xi32> to vector<128x32xi32>
    %27 = arith.cmpi eq, %10, %26 : vector<128x32xi32>
    %28 = arith.extui %27 : vector<128x32xi1> to vector<128x32xi32>
    %29 = arith.sitofp %28 : vector<128x32xi32> to vector<128x32xf32>
    %30 = arith.truncf %29 : vector<128x32xf32> to vector<128x32xbf16>
    %cst_10 = arith.constant dense<0.000000e+00> : vector<16x32xf32>
    %31 = tpu.matmul %8, %30, %cst_10 {dimension_numbers = #tpu.dot_dimension_numbers<[1], [0], [0], [1], [0, 0, 1, 1], [], []>} : vector<16x128xbf16>, vector<128x32xbf16>, vector<16x32xf32> -> vector<16x32xf32>
    %32 = vector.extract_strided_slice %9 {offsets = [3, 0], sizes = [1, 32], strides = [1, 1]} : vector<9x32xi32> to vector<1x32xi32>
    %33 = vector.broadcast %32 : vector<1x32xi32> to vector<128x32xi32>
    %34 = arith.cmpi eq, %10, %33 : vector<128x32xi32>
    %35 = arith.extui %34 : vector<128x32xi1> to vector<128x32xi32>
    %36 = arith.sitofp %35 : vector<128x32xi32> to vector<128x32xf32>
    %37 = arith.truncf %36 : vector<128x32xf32> to vector<128x32xbf16>
    %cst_11 = arith.constant dense<0.000000e+00> : vector<16x32xf32>
    %38 = tpu.matmul %8, %37, %cst_11 {dimension_numbers = #tpu.dot_dimension_numbers<[1], [0], [0], [1], [0, 0, 1, 1], [], []>} : vector<16x128xbf16>, vector<128x32xbf16>, vector<16x32xf32> -> vector<16x32xf32>
    %39 = vector.extract_strided_slice %9 {offsets = [4, 0], sizes = [1, 32], strides = [1, 1]} : vector<9x32xi32> to vector<1x32xi32>
    %40 = vector.broadcast %39 : vector<1x32xi32> to vector<128x32xi32>
    %41 = arith.cmpi eq, %10, %40 : vector<128x32xi32>
    %42 = arith.extui %41 : vector<128x32xi1> to vector<128x32xi32>
    %43 = arith.sitofp %42 : vector<128x32xi32> to vector<128x32xf32>
    %44 = arith.truncf %43 : vector<128x32xf32> to vector<128x32xbf16>
    %cst_12 = arith.constant dense<0.000000e+00> : vector<16x32xf32>
    %45 = tpu.matmul %8, %44, %cst_12 {dimension_numbers = #tpu.dot_dimension_numbers<[1], [0], [0], [1], [0, 0, 1, 1], [], []>} : vector<16x128xbf16>, vector<128x32xbf16>, vector<16x32xf32> -> vector<16x32xf32>
    %46 = vector.extract_strided_slice %9 {offsets = [5, 0], sizes = [1, 32], strides = [1, 1]} : vector<9x32xi32> to vector<1x32xi32>
    %47 = vector.broadcast %46 : vector<1x32xi32> to vector<128x32xi32>
    %48 = arith.cmpi eq, %10, %47 : vector<128x32xi32>
    %49 = arith.extui %48 : vector<128x32xi1> to vector<128x32xi32>
    %50 = arith.sitofp %49 : vector<128x32xi32> to vector<128x32xf32>
    %51 = arith.truncf %50 : vector<128x32xf32> to vector<128x32xbf16>
    %cst_13 = arith.constant dense<0.000000e+00> : vector<16x32xf32>
    %52 = tpu.matmul %8, %51, %cst_13 {dimension_numbers = #tpu.dot_dimension_numbers<[1], [0], [0], [1], [0, 0, 1, 1], [], []>} : vector<16x128xbf16>, vector<128x32xbf16>, vector<16x32xf32> -> vector<16x32xf32>
    %53 = vector.extract_strided_slice %9 {offsets = [6, 0], sizes = [1, 32], strides = [1, 1]} : vector<9x32xi32> to vector<1x32xi32>
    %54 = vector.broadcast %53 : vector<1x32xi32> to vector<128x32xi32>
    %55 = arith.cmpi eq, %10, %54 : vector<128x32xi32>
    %56 = arith.extui %55 : vector<128x32xi1> to vector<128x32xi32>
    %57 = arith.sitofp %56 : vector<128x32xi32> to vector<128x32xf32>
    %58 = arith.truncf %57 : vector<128x32xf32> to vector<128x32xbf16>
    %cst_14 = arith.constant dense<0.000000e+00> : vector<16x32xf32>
    %59 = tpu.matmul %8, %58, %cst_14 {dimension_numbers = #tpu.dot_dimension_numbers<[1], [0], [0], [1], [0, 0, 1, 1], [], []>} : vector<16x128xbf16>, vector<128x32xbf16>, vector<16x32xf32> -> vector<16x32xf32>
    %60 = vector.extract_strided_slice %9 {offsets = [7, 0], sizes = [1, 32], strides = [1, 1]} : vector<9x32xi32> to vector<1x32xi32>
    %61 = vector.broadcast %60 : vector<1x32xi32> to vector<128x32xi32>
    %62 = arith.cmpi eq, %10, %61 : vector<128x32xi32>
    %63 = arith.extui %62 : vector<128x32xi1> to vector<128x32xi32>
    %64 = arith.sitofp %63 : vector<128x32xi32> to vector<128x32xf32>
    %65 = arith.truncf %64 : vector<128x32xf32> to vector<128x32xbf16>
    %cst_15 = arith.constant dense<0.000000e+00> : vector<16x32xf32>
    %66 = tpu.matmul %8, %65, %cst_15 {dimension_numbers = #tpu.dot_dimension_numbers<[1], [0], [0], [1], [0, 0, 1, 1], [], []>} : vector<16x128xbf16>, vector<128x32xbf16>, vector<16x32xf32> -> vector<16x32xf32>
    %67 = vector.extract_strided_slice %9 {offsets = [8, 0], sizes = [1, 32], strides = [1, 1]} : vector<9x32xi32> to vector<1x32xi32>
    %68 = vector.broadcast %67 : vector<1x32xi32> to vector<128x32xi32>
    %69 = arith.cmpi eq, %10, %68 : vector<128x32xi32>
    %70 = arith.extui %69 : vector<128x32xi1> to vector<128x32xi32>
    %71 = arith.sitofp %70 : vector<128x32xi32> to vector<128x32xf32>
    %72 = arith.truncf %71 : vector<128x32xf32> to vector<128x32xbf16>
    %cst_16 = arith.constant dense<0.000000e+00> : vector<16x32xf32>
    %73 = tpu.matmul %8, %72, %cst_16 {dimension_numbers = #tpu.dot_dimension_numbers<[1], [0], [0], [1], [0, 0, 1, 1], [], []>} : vector<16x128xbf16>, vector<128x32xbf16>, vector<16x32xf32> -> vector<16x32xf32>
    %74 = tpu.concatenate %17, %24, %31, %38, %45, %52, %59, %66, %73 in 0 : vector<16x32xf32>, vector<16x32xf32>, vector<16x32xf32>, vector<16x32xf32>, vector<16x32xf32>, vector<16x32xf32>, vector<16x32xf32>, vector<16x32xf32>, vector<16x32xf32> -> vector<144x32xf32>
    %75 = arith.truncf %74 : vector<144x32xf32> to vector<144x32xbf16>
    %c0_17 = arith.constant 0 : index
    %c0_18 = arith.constant 0 : index
    %76 = vector.load %arg4[%c0_17, %c0_18] : memref<16x144xbf16, #tpu.memory_space<vmem>>, vector<16x144xbf16>
    %cst_19 = arith.constant dense<0.000000e+00> : vector<16x32xf32>
    %77 = tpu.matmul %76, %75, %cst_19 {dimension_numbers = #tpu.dot_dimension_numbers<[1], [0], [0], [1], [0, 0, 1, 1], [], []>} : vector<16x144xbf16>, vector<144x32xbf16>, vector<16x32xf32> -> vector<16x32xf32>
    %c0_20 = arith.constant 0 : index
    %c0_21 = arith.constant 0 : index
    %78 = vector.load %arg5[%c0_20, %c0_21] : memref<16x1xf32, #tpu.memory_space<vmem>>, vector<16x1xf32>
    %79 = vector.broadcast %78 : vector<16x1xf32> to vector<16x32xf32>
    %80 = arith.addf %77, %79 : vector<16x32xf32>
    %cst_22 = arith.constant 0.000000e+00 : f32
    %81 = vector.broadcast %cst_22 : f32 to vector<16x32xf32>
    %82 = arith.maximumf %80, %81 : vector<16x32xf32>
    %83 = arith.truncf %82 : vector<16x32xf32> to vector<16x32xbf16>
    %c0_23 = arith.constant 0 : index
    %c0_24 = arith.constant 0 : index
    %84 = vector.load %arg9[%c0_23, %c0_24] : memref<9x8xi32, #tpu.memory_space<vmem>>, vector<9x8xi32>
    %85 = tpu.iota {dimensions = array<i32: 0>} : vector<32x8xi32>
    %86 = vector.extract_strided_slice %84 {offsets = [0, 0], sizes = [1, 8], strides = [1, 1]} : vector<9x8xi32> to vector<1x8xi32>
    %87 = vector.broadcast %86 : vector<1x8xi32> to vector<32x8xi32>
    %88 = arith.cmpi eq, %85, %87 : vector<32x8xi32>
    %89 = arith.extui %88 : vector<32x8xi1> to vector<32x8xi32>
    %90 = arith.sitofp %89 : vector<32x8xi32> to vector<32x8xf32>
    %91 = arith.truncf %90 : vector<32x8xf32> to vector<32x8xbf16>
    %cst_25 = arith.constant dense<0.000000e+00> : vector<16x8xf32>
    %92 = tpu.matmul %83, %91, %cst_25 {dimension_numbers = #tpu.dot_dimension_numbers<[1], [0], [0], [1], [0, 0, 1, 1], [], []>} : vector<16x32xbf16>, vector<32x8xbf16>, vector<16x8xf32> -> vector<16x8xf32>
    %93 = vector.extract_strided_slice %84 {offsets = [1, 0], sizes = [1, 8], strides = [1, 1]} : vector<9x8xi32> to vector<1x8xi32>
    %94 = vector.broadcast %93 : vector<1x8xi32> to vector<32x8xi32>
    %95 = arith.cmpi eq, %85, %94 : vector<32x8xi32>
    %96 = arith.extui %95 : vector<32x8xi1> to vector<32x8xi32>
    %97 = arith.sitofp %96 : vector<32x8xi32> to vector<32x8xf32>
    %98 = arith.truncf %97 : vector<32x8xf32> to vector<32x8xbf16>
    %cst_26 = arith.constant dense<0.000000e+00> : vector<16x8xf32>
    %99 = tpu.matmul %83, %98, %cst_26 {dimension_numbers = #tpu.dot_dimension_numbers<[1], [0], [0], [1], [0, 0, 1, 1], [], []>} : vector<16x32xbf16>, vector<32x8xbf16>, vector<16x8xf32> -> vector<16x8xf32>
    %100 = vector.extract_strided_slice %84 {offsets = [2, 0], sizes = [1, 8], strides = [1, 1]} : vector<9x8xi32> to vector<1x8xi32>
    %101 = vector.broadcast %100 : vector<1x8xi32> to vector<32x8xi32>
    %102 = arith.cmpi eq, %85, %101 : vector<32x8xi32>
    %103 = arith.extui %102 : vector<32x8xi1> to vector<32x8xi32>
    %104 = arith.sitofp %103 : vector<32x8xi32> to vector<32x8xf32>
    %105 = arith.truncf %104 : vector<32x8xf32> to vector<32x8xbf16>
    %cst_27 = arith.constant dense<0.000000e+00> : vector<16x8xf32>
    %106 = tpu.matmul %83, %105, %cst_27 {dimension_numbers = #tpu.dot_dimension_numbers<[1], [0], [0], [1], [0, 0, 1, 1], [], []>} : vector<16x32xbf16>, vector<32x8xbf16>, vector<16x8xf32> -> vector<16x8xf32>
    %107 = vector.extract_strided_slice %84 {offsets = [3, 0], sizes = [1, 8], strides = [1, 1]} : vector<9x8xi32> to vector<1x8xi32>
    %108 = vector.broadcast %107 : vector<1x8xi32> to vector<32x8xi32>
    %109 = arith.cmpi eq, %85, %108 : vector<32x8xi32>
    %110 = arith.extui %109 : vector<32x8xi1> to vector<32x8xi32>
    %111 = arith.sitofp %110 : vector<32x8xi32> to vector<32x8xf32>
    %112 = arith.truncf %111 : vector<32x8xf32> to vector<32x8xbf16>
    %cst_28 = arith.constant dense<0.000000e+00> : vector<16x8xf32>
    %113 = tpu.matmul %83, %112, %cst_28 {dimension_numbers = #tpu.dot_dimension_numbers<[1], [0], [0], [1], [0, 0, 1, 1], [], []>} : vector<16x32xbf16>, vector<32x8xbf16>, vector<16x8xf32> -> vector<16x8xf32>
    %114 = vector.extract_strided_slice %84 {offsets = [4, 0], sizes = [1, 8], strides = [1, 1]} : vector<9x8xi32> to vector<1x8xi32>
    %115 = vector.broadcast %114 : vector<1x8xi32> to vector<32x8xi32>
    %116 = arith.cmpi eq, %85, %115 : vector<32x8xi32>
    %117 = arith.extui %116 : vector<32x8xi1> to vector<32x8xi32>
    %118 = arith.sitofp %117 : vector<32x8xi32> to vector<32x8xf32>
    %119 = arith.truncf %118 : vector<32x8xf32> to vector<32x8xbf16>
    %cst_29 = arith.constant dense<0.000000e+00> : vector<16x8xf32>
    %120 = tpu.matmul %83, %119, %cst_29 {dimension_numbers = #tpu.dot_dimension_numbers<[1], [0], [0], [1], [0, 0, 1, 1], [], []>} : vector<16x32xbf16>, vector<32x8xbf16>, vector<16x8xf32> -> vector<16x8xf32>
    %121 = vector.extract_strided_slice %84 {offsets = [5, 0], sizes = [1, 8], strides = [1, 1]} : vector<9x8xi32> to vector<1x8xi32>
    %122 = vector.broadcast %121 : vector<1x8xi32> to vector<32x8xi32>
    %123 = arith.cmpi eq, %85, %122 : vector<32x8xi32>
    %124 = arith.extui %123 : vector<32x8xi1> to vector<32x8xi32>
    %125 = arith.sitofp %124 : vector<32x8xi32> to vector<32x8xf32>
    %126 = arith.truncf %125 : vector<32x8xf32> to vector<32x8xbf16>
    %cst_30 = arith.constant dense<0.000000e+00> : vector<16x8xf32>
    %127 = tpu.matmul %83, %126, %cst_30 {dimension_numbers = #tpu.dot_dimension_numbers<[1], [0], [0], [1], [0, 0, 1, 1], [], []>} : vector<16x32xbf16>, vector<32x8xbf16>, vector<16x8xf32> -> vector<16x8xf32>
    %128 = vector.extract_strided_slice %84 {offsets = [6, 0], sizes = [1, 8], strides = [1, 1]} : vector<9x8xi32> to vector<1x8xi32>
    %129 = vector.broadcast %128 : vector<1x8xi32> to vector<32x8xi32>
    %130 = arith.cmpi eq, %85, %129 : vector<32x8xi32>
    %131 = arith.extui %130 : vector<32x8xi1> to vector<32x8xi32>
    %132 = arith.sitofp %131 : vector<32x8xi32> to vector<32x8xf32>
    %133 = arith.truncf %132 : vector<32x8xf32> to vector<32x8xbf16>
    %cst_31 = arith.constant dense<0.000000e+00> : vector<16x8xf32>
    %134 = tpu.matmul %83, %133, %cst_31 {dimension_numbers = #tpu.dot_dimension_numbers<[1], [0], [0], [1], [0, 0, 1, 1], [], []>} : vector<16x32xbf16>, vector<32x8xbf16>, vector<16x8xf32> -> vector<16x8xf32>
    %135 = vector.extract_strided_slice %84 {offsets = [7, 0], sizes = [1, 8], strides = [1, 1]} : vector<9x8xi32> to vector<1x8xi32>
    %136 = vector.broadcast %135 : vector<1x8xi32> to vector<32x8xi32>
    %137 = arith.cmpi eq, %85, %136 : vector<32x8xi32>
    %138 = arith.extui %137 : vector<32x8xi1> to vector<32x8xi32>
    %139 = arith.sitofp %138 : vector<32x8xi32> to vector<32x8xf32>
    %140 = arith.truncf %139 : vector<32x8xf32> to vector<32x8xbf16>
    %cst_32 = arith.constant dense<0.000000e+00> : vector<16x8xf32>
    %141 = tpu.matmul %83, %140, %cst_32 {dimension_numbers = #tpu.dot_dimension_numbers<[1], [0], [0], [1], [0, 0, 1, 1], [], []>} : vector<16x32xbf16>, vector<32x8xbf16>, vector<16x8xf32> -> vector<16x8xf32>
    %142 = vector.extract_strided_slice %84 {offsets = [8, 0], sizes = [1, 8], strides = [1, 1]} : vector<9x8xi32> to vector<1x8xi32>
    %143 = vector.broadcast %142 : vector<1x8xi32> to vector<32x8xi32>
    %144 = arith.cmpi eq, %85, %143 : vector<32x8xi32>
    %145 = arith.extui %144 : vector<32x8xi1> to vector<32x8xi32>
    %146 = arith.sitofp %145 : vector<32x8xi32> to vector<32x8xf32>
    %147 = arith.truncf %146 : vector<32x8xf32> to vector<32x8xbf16>
    %cst_33 = arith.constant dense<0.000000e+00> : vector<16x8xf32>
    %148 = tpu.matmul %83, %147, %cst_33 {dimension_numbers = #tpu.dot_dimension_numbers<[1], [0], [0], [1], [0, 0, 1, 1], [], []>} : vector<16x32xbf16>, vector<32x8xbf16>, vector<16x8xf32> -> vector<16x8xf32>
    %149 = tpu.concatenate %92, %99, %106, %113, %120, %127, %134, %141, %148 in 0 : vector<16x8xf32>, vector<16x8xf32>, vector<16x8xf32>, vector<16x8xf32>, vector<16x8xf32>, vector<16x8xf32>, vector<16x8xf32>, vector<16x8xf32>, vector<16x8xf32> -> vector<144x8xf32>
    %150 = arith.truncf %149 : vector<144x8xf32> to vector<144x8xbf16>
    %c0_34 = arith.constant 0 : index
    %c0_35 = arith.constant 0 : index
    %151 = vector.load %arg7[%c0_34, %c0_35] : memref<8x144xbf16, #tpu.memory_space<vmem>>, vector<8x144xbf16>
    %cst_36 = arith.constant dense<0.000000e+00> : vector<8x8xf32>
    %152 = tpu.matmul %151, %150, %cst_36 {dimension_numbers = #tpu.dot_dimension_numbers<[1], [0], [0], [1], [0, 0, 1, 1], [], []>} : vector<8x144xbf16>, vector<144x8xbf16>, vector<8x8xf32> -> vector<8x8xf32>
    %c0_37 = arith.constant 0 : index
    %c0_38 = arith.constant 0 : index
    %153 = vector.load %arg8[%c0_37, %c0_38] : memref<8x1xf32, #tpu.memory_space<vmem>>, vector<8x1xf32>
    %154 = vector.broadcast %153 : vector<8x1xf32> to vector<8x8xf32>
    %155 = arith.addf %152, %154 : vector<8x8xf32>
    %cst_39 = arith.constant 0.000000e+00 : f32
    %156 = vector.broadcast %cst_39 : f32 to vector<8x8xf32>
    %157 = arith.maximumf %155, %156 : vector<8x8xf32>
    %158 = arith.truncf %157 : vector<8x8xf32> to vector<8x8xbf16>
    %c0_40 = arith.constant 0 : index
    %c0_41 = arith.constant 0 : index
    %159 = vector.load %arg12[%c0_40, %c0_41] : memref<9x2xi32, #tpu.memory_space<vmem>>, vector<9x2xi32>
    %160 = tpu.iota {dimensions = array<i32: 0>} : vector<8x2xi32>
    %161 = vector.extract_strided_slice %159 {offsets = [0, 0], sizes = [1, 2], strides = [1, 1]} : vector<9x2xi32> to vector<1x2xi32>
    %162 = vector.broadcast %161 : vector<1x2xi32> to vector<8x2xi32>
    %163 = arith.cmpi eq, %160, %162 : vector<8x2xi32>
    %164 = arith.extui %163 : vector<8x2xi1> to vector<8x2xi32>
    %165 = arith.sitofp %164 : vector<8x2xi32> to vector<8x2xf32>
    %166 = arith.truncf %165 : vector<8x2xf32> to vector<8x2xbf16>
    %cst_42 = arith.constant dense<0.000000e+00> : vector<8x2xf32>
    %167 = tpu.matmul %158, %166, %cst_42 {dimension_numbers = #tpu.dot_dimension_numbers<[1], [0], [0], [1], [0, 0, 1, 1], [], []>} : vector<8x8xbf16>, vector<8x2xbf16>, vector<8x2xf32> -> vector<8x2xf32>
    %168 = vector.extract_strided_slice %159 {offsets = [1, 0], sizes = [1, 2], strides = [1, 1]} : vector<9x2xi32> to vector<1x2xi32>
    %169 = vector.broadcast %168 : vector<1x2xi32> to vector<8x2xi32>
    %170 = arith.cmpi eq, %160, %169 : vector<8x2xi32>
    %171 = arith.extui %170 : vector<8x2xi1> to vector<8x2xi32>
    %172 = arith.sitofp %171 : vector<8x2xi32> to vector<8x2xf32>
    %173 = arith.truncf %172 : vector<8x2xf32> to vector<8x2xbf16>
    %cst_43 = arith.constant dense<0.000000e+00> : vector<8x2xf32>
    %174 = tpu.matmul %158, %173, %cst_43 {dimension_numbers = #tpu.dot_dimension_numbers<[1], [0], [0], [1], [0, 0, 1, 1], [], []>} : vector<8x8xbf16>, vector<8x2xbf16>, vector<8x2xf32> -> vector<8x2xf32>
    %175 = vector.extract_strided_slice %159 {offsets = [2, 0], sizes = [1, 2], strides = [1, 1]} : vector<9x2xi32> to vector<1x2xi32>
    %176 = vector.broadcast %175 : vector<1x2xi32> to vector<8x2xi32>
    %177 = arith.cmpi eq, %160, %176 : vector<8x2xi32>
    %178 = arith.extui %177 : vector<8x2xi1> to vector<8x2xi32>
    %179 = arith.sitofp %178 : vector<8x2xi32> to vector<8x2xf32>
    %180 = arith.truncf %179 : vector<8x2xf32> to vector<8x2xbf16>
    %cst_44 = arith.constant dense<0.000000e+00> : vector<8x2xf32>
    %181 = tpu.matmul %158, %180, %cst_44 {dimension_numbers = #tpu.dot_dimension_numbers<[1], [0], [0], [1], [0, 0, 1, 1], [], []>} : vector<8x8xbf16>, vector<8x2xbf16>, vector<8x2xf32> -> vector<8x2xf32>
    %182 = vector.extract_strided_slice %159 {offsets = [3, 0], sizes = [1, 2], strides = [1, 1]} : vector<9x2xi32> to vector<1x2xi32>
    %183 = vector.broadcast %182 : vector<1x2xi32> to vector<8x2xi32>
    %184 = arith.cmpi eq, %160, %183 : vector<8x2xi32>
    %185 = arith.extui %184 : vector<8x2xi1> to vector<8x2xi32>
    %186 = arith.sitofp %185 : vector<8x2xi32> to vector<8x2xf32>
    %187 = arith.truncf %186 : vector<8x2xf32> to vector<8x2xbf16>
    %cst_45 = arith.constant dense<0.000000e+00> : vector<8x2xf32>
    %188 = tpu.matmul %158, %187, %cst_45 {dimension_numbers = #tpu.dot_dimension_numbers<[1], [0], [0], [1], [0, 0, 1, 1], [], []>} : vector<8x8xbf16>, vector<8x2xbf16>, vector<8x2xf32> -> vector<8x2xf32>
    %189 = vector.extract_strided_slice %159 {offsets = [4, 0], sizes = [1, 2], strides = [1, 1]} : vector<9x2xi32> to vector<1x2xi32>
    %190 = vector.broadcast %189 : vector<1x2xi32> to vector<8x2xi32>
    %191 = arith.cmpi eq, %160, %190 : vector<8x2xi32>
    %192 = arith.extui %191 : vector<8x2xi1> to vector<8x2xi32>
    %193 = arith.sitofp %192 : vector<8x2xi32> to vector<8x2xf32>
    %194 = arith.truncf %193 : vector<8x2xf32> to vector<8x2xbf16>
    %cst_46 = arith.constant dense<0.000000e+00> : vector<8x2xf32>
    %195 = tpu.matmul %158, %194, %cst_46 {dimension_numbers = #tpu.dot_dimension_numbers<[1], [0], [0], [1], [0, 0, 1, 1], [], []>} : vector<8x8xbf16>, vector<8x2xbf16>, vector<8x2xf32> -> vector<8x2xf32>
    %196 = vector.extract_strided_slice %159 {offsets = [5, 0], sizes = [1, 2], strides = [1, 1]} : vector<9x2xi32> to vector<1x2xi32>
    %197 = vector.broadcast %196 : vector<1x2xi32> to vector<8x2xi32>
    %198 = arith.cmpi eq, %160, %197 : vector<8x2xi32>
    %199 = arith.extui %198 : vector<8x2xi1> to vector<8x2xi32>
    %200 = arith.sitofp %199 : vector<8x2xi32> to vector<8x2xf32>
    %201 = arith.truncf %200 : vector<8x2xf32> to vector<8x2xbf16>
    %cst_47 = arith.constant dense<0.000000e+00> : vector<8x2xf32>
    %202 = tpu.matmul %158, %201, %cst_47 {dimension_numbers = #tpu.dot_dimension_numbers<[1], [0], [0], [1], [0, 0, 1, 1], [], []>} : vector<8x8xbf16>, vector<8x2xbf16>, vector<8x2xf32> -> vector<8x2xf32>
    %203 = vector.extract_strided_slice %159 {offsets = [6, 0], sizes = [1, 2], strides = [1, 1]} : vector<9x2xi32> to vector<1x2xi32>
    %204 = vector.broadcast %203 : vector<1x2xi32> to vector<8x2xi32>
    %205 = arith.cmpi eq, %160, %204 : vector<8x2xi32>
    %206 = arith.extui %205 : vector<8x2xi1> to vector<8x2xi32>
    %207 = arith.sitofp %206 : vector<8x2xi32> to vector<8x2xf32>
    %208 = arith.truncf %207 : vector<8x2xf32> to vector<8x2xbf16>
    %cst_48 = arith.constant dense<0.000000e+00> : vector<8x2xf32>
    %209 = tpu.matmul %158, %208, %cst_48 {dimension_numbers = #tpu.dot_dimension_numbers<[1], [0], [0], [1], [0, 0, 1, 1], [], []>} : vector<8x8xbf16>, vector<8x2xbf16>, vector<8x2xf32> -> vector<8x2xf32>
    %210 = vector.extract_strided_slice %159 {offsets = [7, 0], sizes = [1, 2], strides = [1, 1]} : vector<9x2xi32> to vector<1x2xi32>
    %211 = vector.broadcast %210 : vector<1x2xi32> to vector<8x2xi32>
    %212 = arith.cmpi eq, %160, %211 : vector<8x2xi32>
    %213 = arith.extui %212 : vector<8x2xi1> to vector<8x2xi32>
    %214 = arith.sitofp %213 : vector<8x2xi32> to vector<8x2xf32>
    %215 = arith.truncf %214 : vector<8x2xf32> to vector<8x2xbf16>
    %cst_49 = arith.constant dense<0.000000e+00> : vector<8x2xf32>
    %216 = tpu.matmul %158, %215, %cst_49 {dimension_numbers = #tpu.dot_dimension_numbers<[1], [0], [0], [1], [0, 0, 1, 1], [], []>} : vector<8x8xbf16>, vector<8x2xbf16>, vector<8x2xf32> -> vector<8x2xf32>
    %217 = vector.extract_strided_slice %159 {offsets = [8, 0], sizes = [1, 2], strides = [1, 1]} : vector<9x2xi32> to vector<1x2xi32>
    %218 = vector.broadcast %217 : vector<1x2xi32> to vector<8x2xi32>
    %219 = arith.cmpi eq, %160, %218 : vector<8x2xi32>
    %220 = arith.extui %219 : vector<8x2xi1> to vector<8x2xi32>
    %221 = arith.sitofp %220 : vector<8x2xi32> to vector<8x2xf32>
    %222 = arith.truncf %221 : vector<8x2xf32> to vector<8x2xbf16>
    %cst_50 = arith.constant dense<0.000000e+00> : vector<8x2xf32>
    %223 = tpu.matmul %158, %222, %cst_50 {dimension_numbers = #tpu.dot_dimension_numbers<[1], [0], [0], [1], [0, 0, 1, 1], [], []>} : vector<8x8xbf16>, vector<8x2xbf16>, vector<8x2xf32> -> vector<8x2xf32>
    %224 = tpu.concatenate %167, %174, %181, %188, %195, %202, %209, %216, %223 in 0 : vector<8x2xf32>, vector<8x2xf32>, vector<8x2xf32>, vector<8x2xf32>, vector<8x2xf32>, vector<8x2xf32>, vector<8x2xf32>, vector<8x2xf32>, vector<8x2xf32> -> vector<72x2xf32>
    %225 = arith.truncf %224 : vector<72x2xf32> to vector<72x2xbf16>
    %c0_51 = arith.constant 0 : index
    %c0_52 = arith.constant 0 : index
    %226 = vector.load %arg10[%c0_51, %c0_52] : memref<8x72xbf16, #tpu.memory_space<vmem>>, vector<8x72xbf16>
    %cst_53 = arith.constant dense<0.000000e+00> : vector<8x2xf32>
    %227 = tpu.matmul %226, %225, %cst_53 {dimension_numbers = #tpu.dot_dimension_numbers<[1], [0], [0], [1], [0, 0, 1, 1], [], []>} : vector<8x72xbf16>, vector<72x2xbf16>, vector<8x2xf32> -> vector<8x2xf32>
    %c0_54 = arith.constant 0 : index
    %c0_55 = arith.constant 0 : index
    %228 = vector.load %arg11[%c0_54, %c0_55] : memref<8x1xf32, #tpu.memory_space<vmem>>, vector<8x1xf32>
    %229 = vector.broadcast %228 : vector<8x1xf32> to vector<8x2xf32>
    %230 = arith.addf %227, %229 : vector<8x2xf32>
    %cst_56 = arith.constant 0.000000e+00 : f32
    %231 = vector.broadcast %cst_56 : f32 to vector<8x2xf32>
    %232 = arith.maximumf %230, %231 : vector<8x2xf32>
    %c0_57 = arith.constant 0 : index
    %c0_58 = arith.constant 0 : index
    %233 = vector.load %arg13[%c0_57, %c0_58] : memref<8x2xf32, #tpu.memory_space<vmem>>, vector<8x2xf32>
    tpu.vector_store %arg13[%c0_57, %c0_58], %232 {strides = array<i32>} : memref<8x2xf32, #tpu.memory_space<vmem>>, vector<8x2xf32>,
    return
  }
  func.func @transform_0(%arg0: i32) -> (i32, i32) {
    %c0_i32 = arith.constant 0 : i32
    %c0_i32_0 = arith.constant 0 : i32
    %c0_i32_1 = arith.constant 0 : i32
    return %c0_i32, %c0_i32_0 : i32, i32
  }
  func.func @transform_1(%arg0: i32) -> (i32, i32) {
    %c0_i32 = arith.constant 0 : i32
    %c0_i32_0 = arith.constant 0 : i32
    %c0_i32_1 = arith.constant 0 : i32
    return %c0_i32, %c0_i32_0 : i32, i32
  }
  func.func @transform_2(%arg0: i32) -> (i32, i32) {
    %c0_i32 = arith.constant 0 : i32
    %c0_i32_0 = arith.constant 0 : i32
    %c0_i32_1 = arith.constant 0 : i32
    return %c0_i32, %c0_i32_0 : i32, i32
  }
  func.func @transform_3(%arg0: i32) -> (i32, i32) {
    %c0_i32 = arith.constant 0 : i32
    %c0_i32_0 = arith.constant 0 : i32
    %c0_i32_1 = arith.constant 0 : i32
    return %c0_i32, %c0_i32_0 : i32, i32
  }
  func.func @transform_4(%arg0: i32) -> (i32, i32) {
    %c0_i32 = arith.constant 0 : i32
    %c0_i32_0 = arith.constant 0 : i32
    %c0_i32_1 = arith.constant 0 : i32
    return %c0_i32, %c0_i32_0 : i32, i32
  }
  func.func @transform_5(%arg0: i32) -> (i32, i32) {
    %c0_i32 = arith.constant 0 : i32
    %c0_i32_0 = arith.constant 0 : i32
    %c0_i32_1 = arith.constant 0 : i32
    return %c0_i32, %c0_i32_0 : i32, i32
  }
  func.func @transform_6(%arg0: i32) -> (i32, i32) {
    %c0_i32 = arith.constant 0 : i32
    %c0_i32_0 = arith.constant 0 : i32
    %c0_i32_1 = arith.constant 0 : i32
    return %c0_i32, %c0_i32_0 : i32, i32
  }
  func.func @transform_7(%arg0: i32) -> (i32, i32) {
    %c0_i32 = arith.constant 0 : i32
    %c0_i32_0 = arith.constant 0 : i32
    %c0_i32_1 = arith.constant 0 : i32
    return %c0_i32, %c0_i32_0 : i32, i32
  }
  func.func @transform_8(%arg0: i32) -> (i32, i32) {
    %c0_i32 = arith.constant 0 : i32
    %c0_i32_0 = arith.constant 0 : i32
    %c0_i32_1 = arith.constant 0 : i32
    return %c0_i32, %c0_i32_0 : i32, i32
  }
  func.func @transform_9(%arg0: i32) -> (i32, i32) {
    %c0_i32 = arith.constant 0 : i32
    %c0_i32_0 = arith.constant 0 : i32
    %c0_i32_1 = arith.constant 0 : i32
    return %c0_i32, %c0_i32_0 : i32, i32
  }
  func.func @transform_10(%arg0: i32) -> (i32, i32) {
    %c0_i32 = arith.constant 0 : i32
    %c0_i32_0 = arith.constant 0 : i32
    %c0_i32_1 = arith.constant 0 : i32
    return %c0_i32, %c0_i32_0 : i32, i32
  }
  func.func @transform_11(%arg0: i32) -> (i32, i32) {
    %c0_i32 = arith.constant 0 : i32
    %c0_i32_0 = arith.constant 0 : i32
    %c0_i32_1 = arith.constant 0 : i32
    return %c0_i32, %c0_i32_0 : i32, i32
  }
  func.func @transform_12(%arg0: i32) -> (i32, i32) {
    %c0_i32 = arith.constant 0 : i32
    %c0_i32_0 = arith.constant 0 : i32
    %c0_i32_1 = arith.constant 0 : i32
    return %c0_i32, %c0_i32_0 : i32, i32
  }
}

</mosaic_0001>

<bundles_post_ra>
// kernel: encoder_forward.1
= control target key start
LH: loop header
LB: loop body
LE: loop exit
PB: predicated region body
PF: predicated region fallthrough
CT: control target
= control target key end

     0   :  { %vm2493_vm0 = vcmask 1043456   ;;  %vm73_vm1 = vcmask 1044480   ;;  %v1796_v2 = vmov 65535   ;;  %v98_v4 = vlaneseq  ;;  %s2480_s0 = inlined_call_operand.vmem [shape: bf16[9,128], index: 0, kind: input, shape index: {}]   ;;  %s2481_s2 = inlined_call_operand.vmem [shape: f32[16,1], index: 2, kind: input, shape index: {}]   ;;  %s2482_s5 = inlined_call_operand.vmem [shape: s32[9,32], index: 5, kind: input, shape index: {}]   ;;  %s2483_s1 = inlined_call_operand.vmem [shape: bf16[16,9], index: 1, kind: input, shape index: {}]   ;;  %s2484_s4 = inlined_call_operand.vmem [shape: f32[16,1], index: 4, kind: input, shape index: {}]   ;;  %s2485_s3 = inlined_call_operand.vmem [shape: bf16[16,144], index: 3, kind: input, shape index: {}]   ;;  %s2486_s8 = inlined_call_operand.vmem [shape: s32[9,8], index: 8, kind: input, shape index: {}]   ;;  %s2487_s11 = inlined_call_operand.vmem [shape: s32[9,2], index: 11, kind: input, shape index: {}]   ;;  %s2488_s6 = inlined_call_operand.vmem [shape: bf16[8,144], index: 6, kind: input, shape index: {}]   ;;  %s2489_s7 = inlined_call_operand.vmem [shape: f32[8,1], index: 7, kind: input, shape index: {}]   ;;  %s2490_s10 = inlined_call_operand.vmem [shape: f32[8,1], index: 10, kind: input, shape index: {}]   ;;  %s2491_s9 = inlined_call_operand.vmem [shape: bf16[8,72], index: 9, kind: input, shape index: {}]   ;;  %s2492_s12 = inlined_call_operand.vmem [shape: f32[8,2], index: 12, kind: output, shape index: {}]  }
   0x1   :  { %v1381_v0 = vld [vmem:[%s2480_s0] sm:$0xf]  ;;  %v1783_v1 = vld [vmem:[%s2480_s0] sm:$0x10]  ;;  %v74_v3 = vsel %vm2493_vm0, 4294967295, %v1796_v2  ;;  %v1797_v9 = vmov 0  }
   0x2   :  { %v1382_v5 = vor.u32 %v1783_v1, %v1381_v0  ;;  %v75_v6 = vsel %vm73_vm1, %v74_v3, 0  ;;  %v46_v7 = vld [vmem:[%s2481_s2] sm:$0xff]  ;;  %1790 = vset.pattern.permute.xlu0 %v1797_v9  ;;  %v1880_v10 = vshrl.u32 %v98_v4, 7  ;;  %1791 = vset.pattern.permute.xlu1 %v1797_v9  ;;  %vm68_vm2 = vcmask 72704   ;;  %v47_v25 = vld [vmem:[%s2481_s2 + $0x8] sm:$0xff] }
   0x3   :  { %v1878_v8 = vld [vmem:[%s2482_s5] sm:$0xff]  ;;  %50 = vperm.xlu0 %1790, %v46_v7   ;;  %1792 = vset.pattern.permute.xlu2 %v1797_v9  ;;  %v1798_v26 = vmov 1.0|1.0   ;;  %v1793_v47 = vld [vmem:[%s2482_s5 + $0x8] ss:$0 sm:$0xff] }
   0x4   :  { %v1883_v11 = vperm.slane %v1878_v8, 0  ;;  %v77_v12 = vand.u32 %v1382_v5, %v75_v6  ;;  %v1886_v13 = vperm.slane %v1878_v8, 1  ;;  %v1782_v14 = vld [vmem:[%s2483_s1] sm:$0xff]  ;;  %v1892_v15 = vadd.s32 112, %v1880_v10  ;;  %v1794_v38 = vld [vmem:[%s2486_s8 + $0x8] ss:$0 sm:$0xff] }
   0x5   :  { %v1895_v16 = vadd.s32 120, %v1880_v10  ;;  %v1898_v17 = vadd.s32 96, %v1880_v10  ;;  %v1901_v18 = vadd.s32 104, %v1880_v10  ;;  %v1904_v19 = vadd.s32 80, %v1880_v10  ;;  %v765_v5 = vld [vmem:[%s2484_s4] sm:$0xff] }
   0x6   :  { %86 = vmatpush.bf16.msra.mxu0 %v77_v12  ;;  %v1907_v20 = vadd.s32 88, %v1880_v10  ;;  %v1910_v21 = vperm.slane %v1878_v8, 2  ;;  %v1913_v22 = vperm.slane %v1878_v8, 3  ;;  %vm130_vm3 = vcmp.eq.s32.totalorder %v1892_v15, %v1883_v11  ;;  %769 = vperm.xlu1 %1791, %v765_v5   ;;  %v2363_v27 = vld [vmem:[%s2486_s8] sm:$0xff] }
   0x7   :  { %vm131_vm4 = vcmp.eq.s32.totalorder %v1895_v16, %v1883_v11  ;;  %vm128_vm5 = vcmp.eq.s32.totalorder %v1898_v17, %v1883_v11  ;;  %vm129_vm6 = vcmp.eq.s32.totalorder %v1901_v18, %v1883_v11  ;;  %vm126_vm8 = vcmp.eq.s32.totalorder %v1904_v19, %v1883_v11 }
   0x8   :  { %vm1400_vm7 = vmpackc.low %vm131_vm4, %vm130_vm3  ;;  %vm127_vm9 = vcmp.eq.s32.totalorder %v1907_v20, %v1883_v11  ;;  %v1928_v23 = vadd.s32 64, %v1880_v10  ;;  %v1931_v24 = vadd.s32 72, %v1880_v10  ;;  %vm201_vm10 = vcmp.eq.s32.totalorder %v1892_v15, %v1886_v13 }
   0x9   :  { %1383 = vmatmul.msk.bf16.vlgmr.msra.gmra.mxu0 %vm68_vm2, %v1782_v14  ;;  %1401 = vmatpush.bf16.msk.msra.mxu1 %vm1400_vm7, %v1798_v26  ;;  %vm202_vm11 = vcmp.eq.s32.totalorder %v1895_v16, %v1886_v13  ;;  %vm1402_vm12 = vmpackc.low %vm129_vm6, %vm128_vm5  ;;  %vm272_vm13 = vcmp.eq.s32.totalorder %v1892_v15, %v1910_v21  ;;  %vm273_vm14 = vcmp.eq.s32.totalorder %v1895_v16, %v1910_v21  ;;  %v1959_v28 = vadd.s32 48, %v1880_v10  ;;  %v1784_v14 = vld [vmem:[%s2485_s3 + $0x4] sm:$0xf] }
   0xa   :  { %vm1946_vm15 = vmpackc.low %vm127_vm9, %vm126_vm8  ;;  %vm343_vm1 = vcmp.eq.s32.totalorder %v1892_v15, %v1913_v22  ;;  %vm344_vm2 = vcmp.eq.s32.totalorder %v1895_v16, %v1913_v22  ;;  %vm124_vm3 = vcmp.eq.s32.totalorder %v1928_v23, %v1883_v11  ;;  %vm125_vm4 = vcmp.eq.s32.totalorder %v1931_v24, %v1883_v11 }
   0xb   :  { %55 = vperm.xlu0 %1790, %v47_v25   ;;  %vm1432_vm5 = vmpackc.low %vm202_vm11, %vm201_vm10  ;;  %v1962_v29 = vadd.s32 56, %v1880_v10  ;;  %vm199_vm7 = vcmp.eq.s32.totalorder %v1898_v17, %v1886_v13  ;;  %vm200_vm8 = vcmp.eq.s32.totalorder %v1901_v18, %v1886_v13  ;;  %vm270_vm10 = vcmp.eq.s32.totalorder %v1898_v17, %v1910_v21 }
   0xc   :  { %1433 = vmatpush.bf16.msk.msra.mxu2 %vm1432_vm5, %v1798_v26  ;;  %vm1464_vm6 = vmpackc.low %vm273_vm14, %vm272_vm13  ;;  %vm271_vm11 = vcmp.eq.s32.totalorder %v1901_v18, %v1910_v21  ;;  %vm342_vm13 = vcmp.eq.s32.totalorder %v1901_v18, %v1913_v22  ;;  %vm122_vm14 = vcmp.eq.s32.totalorder %v1959_v28, %v1883_v11  ;;  %v1989_v31 = vadd.s32 32, %v1880_v10 }
   0xd   :  { %1403 = vmatpush.bf16.msk.msra.mxu1 %vm1402_vm12, %v1798_v26  ;;  %1465 = vmatpush.bf16.msk.msra.mxu3 %vm1464_vm6, %v1798_v26  ;;  %vm1496_vm9 = vmpackc.low %vm344_vm2, %vm343_vm1  ;;  %vm341_vm12 = vcmp.eq.s32.totalorder %v1898_v17, %v1913_v22  ;;  %vm123_vm1 = vcmp.eq.s32.totalorder %v1962_v29, %v1883_v11  ;;  %v1992_v32 = vadd.s32 40, %v1880_v10  ;;  %vm198_vm5 = vcmp.eq.s32.totalorder %v1907_v20, %v1886_v13 }
   0xe   :  { %vm1975_vm0 = vmpackc.low %vm125_vm4, %vm124_vm3  ;;  %1497 = vmatpush.bf16.msk.msrb.mxu0 %vm1496_vm9, %v1798_v26  ;;  %vm197_vm4 = vcmp.eq.s32.totalorder %v1904_v19, %v1886_v13  ;;  %v2021_v34 = vadd.s32 16, %v1880_v10  ;;  %v2024_v35 = vadd.s32 24, %v1880_v10  ;;  %v2053_v37 = vadd.s32 8, %v1880_v10 }
   0xf   :  { %vm1434_vm2 = vmpackc.low %vm200_vm8, %vm199_vm7  ;;  %vm268_vm7 = vcmp.eq.s32.totalorder %v1904_v19, %v1910_v21  ;;  %vm269_vm8 = vcmp.eq.s32.totalorder %v1907_v20, %v1910_v21  ;;  %v2082_v39 = vperm.slane %v1878_v8, 4  ;;  %v2157_v41 = vperm.slane %v1878_v8, 5 }
  0x10   :  { %1435 = vmatpush.bf16.msk.msra.mxu2 %vm1434_vm2, %v1798_v26  ;;  %vm1466_vm3 = vmpackc.low %vm271_vm11, %vm270_vm10  ;;  %vm340_vm10 = vcmp.eq.s32.totalorder %v1907_v20, %v1913_v22  ;;  %vm120_vm11 = vcmp.eq.s32.totalorder %v1989_v31, %v1883_v11  ;;  %vm196_vm2 = vcmp.eq.s32.totalorder %v1931_v24, %v1886_v13  ;;  %v2160_v42 = vperm.slane %v1878_v8, 6 }
  0x11   :  { %1405 = vmatpush.bf16.msk.msra.mxu1 %vm1946_vm15, %v1798_v26  ;;  %1467 = vmatpush.bf16.msk.msra.mxu3 %vm1466_vm3, %v1798_v26  ;;  %vm1498_vm6 = vmpackc.low %vm342_vm13, %vm341_vm12  ;;  %vm339_vm15 = vcmp.eq.s32.totalorder %v1904_v19, %v1913_v22  ;;  %vm121_vm12 = vcmp.eq.s32.totalorder %v1992_v32, %v1883_v11  ;;  %v2182_v43 = vperm.slane %v1878_v8, 7  ;;  %v914_v30 = vperm.slane %v2363_v27, 3 }
  0x12   :  { %vm2007_vm9 = vmpackc.low %vm123_vm1, %vm122_vm14  ;;  %1499 = vmatpush.bf16.msk.msrb.mxu0 %vm1498_vm6, %v1798_v26  ;;  %vm195_vm1 = vcmp.eq.s32.totalorder %v1928_v23, %v1886_v13  ;;  %v972_v33 = vperm.slane %v2363_v27, 5  ;;  %v1030_v36 = vperm.slane %v2363_v27, 7 }
  0x13   :  { %vm1436_vm13 = vmpackc.low %vm198_vm5, %vm197_vm4  ;;  %vm266_vm4 = vcmp.eq.s32.totalorder %v1928_v23, %v1910_v21  ;;  %vm267_vm5 = vcmp.eq.s32.totalorder %v1931_v24, %v1910_v21 }
  0x14   :  { %1437 = vmatpush.bf16.msk.msra.mxu2 %vm1436_vm13, %v1798_v26  ;;  %vm1468_vm14 = vmpackc.low %vm269_vm8, %vm268_vm7  ;;  %vm338_vm7 = vcmp.eq.s32.totalorder %v1931_v24, %v1913_v22  ;;  %vm118_vm8 = vcmp.eq.s32.totalorder %v2021_v34, %v1883_v11  ;;  %vm194_vm13 = vcmp.eq.s32.totalorder %v1962_v29, %v1886_v13 }
  0x15   :  { %1407 = vmatpush.bf16.msk.msra.mxu1 %vm1975_vm0, %v1798_v26  ;;  %1469 = vmatpush.bf16.msk.msra.mxu3 %vm1468_vm14, %v1798_v26  ;;  %vm1500_vm3 = vmpackc.low %vm340_vm10, %vm339_vm15  ;;  %vm337_vm0 = vcmp.eq.s32.totalorder %v1928_v23, %v1913_v22  ;;  %vm119_vm15 = vcmp.eq.s32.totalorder %v2024_v35, %v1883_v11 }
  0x16   :  { %vm2039_vm6 = vmpackc.low %vm121_vm12, %vm120_vm11  ;;  %1501 = vmatpush.bf16.msk.msrb.mxu0 %vm1500_vm3, %v1798_v26  ;;  %vm193_vm12 = vcmp.eq.s32.totalorder %v1959_v28, %v1886_v13 }
  0x17   :  { %vm1438_vm10 = vmpackc.low %vm196_vm2, %vm195_vm1  ;;  %vm264_vm1 = vcmp.eq.s32.totalorder %v1959_v28, %v1910_v21  ;;  %vm265_vm2 = vcmp.eq.s32.totalorder %v1962_v29, %v1910_v21 }
  0x18   :  { %1439 = vmatpush.bf16.msk.msra.mxu2 %vm1438_vm10, %v1798_v26  ;;  %vm1470_vm11 = vmpackc.low %vm267_vm5, %vm266_vm4  ;;  %vm336_vm4 = vcmp.eq.s32.totalorder %v1962_v29, %v1913_v22  ;;  %vm116_vm5 = vcmp.eq.s32.totalorder %v1880_v10, %v1883_v11  ;;  %vm192_vm10 = vcmp.eq.s32.totalorder %v1992_v32, %v1886_v13 }
  0x19   :  { %1409 = vmatpush.bf16.msk.msra.mxu1 %vm2007_vm9, %v1798_v26  ;;  %1471 = vmatpush.bf16.msk.msra.mxu3 %vm1470_vm11, %v1798_v26  ;;  %vm1502_vm14 = vmpackc.low %vm338_vm7, %vm337_vm0  ;;  %vm335_vm9 = vcmp.eq.s32.totalorder %v1959_v28, %v1913_v22  ;;  %vm117_vm0 = vcmp.eq.s32.totalorder %v2053_v37, %v1883_v11  ;;  %v766_v11 = vld [vmem:[%s2484_s4 + $0x8] sm:$0xff] }
  0x1a   :  { %vm2068_vm3 = vmpackc.low %vm119_vm15, %vm118_vm8  ;;  %1503 = vmatpush.bf16.msk.msrb.mxu0 %vm1502_vm14, %v1798_v26  ;;  %vm191_vm15 = vcmp.eq.s32.totalorder %v1989_v31, %v1886_v13  ;;  %774 = vperm.xlu1 %1791, %v766_v11   ;;  %v1342_v11 = vld [vmem:[%s2490_s10] sm:$0xff] }
  0x1b   :  { %vm1440_vm7 = vmpackc.low %vm194_vm13, %vm193_vm12  ;;  %vm262_vm12 = vcmp.eq.s32.totalorder %v1989_v31, %v1910_v21  ;;  %vm263_vm13 = vcmp.eq.s32.totalorder %v1992_v32, %v1910_v21 }
  0x1c   :  { %1441 = vmatpush.bf16.msk.msra.mxu2 %vm1440_vm7, %v1798_v26  ;;  %vm1472_vm8 = vmpackc.low %vm265_vm2, %vm264_vm1  ;;  %vm334_vm1 = vcmp.eq.s32.totalorder %v1992_v32, %v1913_v22  ;;  %vm414_vm2 = vcmp.eq.s32.totalorder %v1892_v15, %v2082_v39 }
  0x1d   :  { %1411 = vmatpush.bf16.msk.msra.mxu1 %vm2039_vm6, %v1798_v26  ;;  %1473 = vmatpush.bf16.msk.msra.mxu3 %vm1472_vm8, %v1798_v26  ;;  %vm1504_vm11 = vmpackc.low %vm336_vm4, %vm335_vm9  ;;  %vm333_vm6 = vcmp.eq.s32.totalorder %v1989_v31, %v1913_v22  ;;  %vm415_vm9 = vcmp.eq.s32.totalorder %v1895_v16, %v2082_v39  ;;  %vm412_vm8 = vcmp.eq.s32.totalorder %v1898_v17, %v2082_v39 }
  0x1e   :  { %vm2097_vm14 = vmpackc.low %vm117_vm0, %vm116_vm5  ;;  %1505 = vmatpush.bf16.msk.msrb.mxu0 %vm1504_vm11, %v1798_v26  ;;  %vm413_vm11 = vcmp.eq.s32.totalorder %v1901_v18, %v2082_v39 }
  0x1f   :  { %vm1442_vm4 = vmpackc.low %vm192_vm10, %vm191_vm15  ;;  %vm189_vm15 = vcmp.eq.s32.totalorder %v2021_v34, %v1886_v13  ;;  %vm190_vm10 = vcmp.eq.s32.totalorder %v2024_v35, %v1886_v13 }
  0x20   :  { %1443 = vmatpush.bf16.msk.msra.mxu2 %vm1442_vm4, %v1798_v26  ;;  %vm1474_vm5 = vmpackc.low %vm263_vm13, %vm262_vm12  ;;  %vm260_vm12 = vcmp.eq.s32.totalorder %v2021_v34, %v1910_v21  ;;  %vm261_vm13 = vcmp.eq.s32.totalorder %v2024_v35, %v1910_v21 }
  0x21   :  { %1413 = vmatpush.bf16.msk.msra.mxu1 %vm2068_vm3, %v1798_v26  ;;  %1475 = vmatpush.bf16.msk.msra.mxu3 %vm1474_vm5, %v1798_v26  ;;  %vm1506_vm0 = vmpackc.low %vm334_vm1, %vm333_vm6  ;;  %vm332_vm1 = vcmp.eq.s32.totalorder %v2024_v35, %v1913_v22  ;;  %vm187_vm5 = vcmp.eq.s32.totalorder %v1880_v10, %v1886_v13 }
  0x22   :  { %vm1528_vm7 = vmpackc.low %vm415_vm9, %vm414_vm2  ;;  %1507 = vmatpush.bf16.msk.msrb.mxu0 %vm1506_vm0, %v1798_v26  ;;  %vm410_vm2 = vcmp.eq.s32.totalorder %v1904_v19, %v2082_v39  ;;  %vm411_vm9 = vcmp.eq.s32.totalorder %v1907_v20, %v2082_v39  ;;  %vm188_vm0 = vcmp.eq.s32.totalorder %v2053_v37, %v1886_v13 }
  0x23   :  { %vm1530_vm3 = vmpackc.low %vm413_vm11, %vm412_vm8  ;;  %vm258_vm8 = vcmp.eq.s32.totalorder %v1880_v10, %v1910_v21  ;;  %vm259_vm11 = vcmp.eq.s32.totalorder %v2053_v37, %v1910_v21 }
  0x24   :  { %vm1444_vm6 = vmpackc.low %vm190_vm10, %vm189_vm15  ;;  %vm329_vm15 = vcmp.eq.s32.totalorder %v1880_v10, %v1913_v22  ;;  %vm330_vm10 = vcmp.eq.s32.totalorder %v2053_v37, %v1913_v22 }
  0x25   :  { %1415 = vmatpush.bf16.msk.msra.mxu1 %vm2097_vm14, %v1798_v26  ;;  %vm331_vm14 = vcmp.eq.s32.totalorder %v2021_v34, %v1913_v22  ;;  %1445 = vmatpush.bf16.msk.msra.mxu2 %vm1444_vm6, %v1798_v26  ;;  %vm1476_vm4 = vmpackc.low %vm261_vm13, %vm260_vm12  ;;  %vm408_vm13 = vcmp.eq.s32.totalorder %v1928_v23, %v2082_v39  ;;  %vm409_vm6 = vcmp.eq.s32.totalorder %v1931_v24, %v2082_v39  ;;  %v1674_v22 = vld [vmem:[%s2485_s3] sm:$0xf] }
  0x26   :  { %1477 = vmatpush.bf16.msk.msra.mxu3 %vm1476_vm4, %v1798_v26  ;;  %vm1446_vm12 = vmpackc.low %vm188_vm0, %vm187_vm5  ;;  %vm556_vm4 = vcmp.eq.s32.totalorder %v1892_v15, %v2160_v42  ;;  %vm557_vm5 = vcmp.eq.s32.totalorder %v1895_v16, %v2160_v42 }
  0x27   :  { %vm1534_vm0 = vmpackc.low %vm409_vm6, %vm408_vm13  ;;  %vm483_vm6 = vcmp.eq.s32.totalorder %v1898_v17, %v2157_v41 }
  0x29   :  { %1529 = vmatpush.bf16.msk.msrb.mxu1 %vm1528_vm7, %v1798_v26  ;;  %vm1508_vm7 = vmpackc.low %vm332_vm1, %vm331_vm14  ;;  %1447 = vmatpush.bf16.msk.msra.mxu2 %vm1446_vm12, %v1798_v26  ;;  %vm485_vm1 = vcmp.eq.s32.totalorder %v1892_v15, %v2157_v41  ;;  %vm407_vm12 = vcmp.eq.s32.totalorder %v1962_v29, %v2082_v39 }
  0x2a   :  { %1509 = vmatpush.bf16.msk.msrb.mxu0 %vm1508_vm7, %v1798_v26  ;;  %vm1478_vm14 = vmpackc.low %vm259_vm11, %vm258_vm8  ;;  %vm627_vm11 = vcmp.eq.s32.totalorder %v1892_v15, %v2182_v43 }
  0x2b   :  { %1479 = vmatpush.bf16.msk.msra.mxu3 %vm1478_vm14, %v1798_v26  ;;  %vm1592_vm8 = vmpackc.low %vm557_vm5, %vm556_vm4  ;;  %vm484_vm14 = vcmp.eq.s32.totalorder %v1901_v18, %v2157_v41  ;;  %vm625_vm4 = vcmp.eq.s32.totalorder %v1898_v17, %v2182_v43  ;;  %vm626_vm5 = vcmp.eq.s32.totalorder %v1901_v18, %v2182_v43 }
  0x2d   :  { %1531 = vmatpush.bf16.msk.msrb.mxu1 %vm1530_vm3, %v1798_v26  ;;  %vm1532_vm3 = vmpackc.low %vm411_vm9, %vm410_vm2  ;;  %vm486_vm2 = vcmp.eq.s32.totalorder %v1895_v16, %v2157_v41 }
  0x2e   :  { %vm1510_vm9 = vmpackc.low %vm330_vm10, %vm329_vm15  ;;  %vm406_vm10 = vcmp.eq.s32.totalorder %v1959_v28, %v2082_v39 }
  0x2f   :  { %1511 = vmatpush.bf16.msk.msrb.mxu0 %vm1510_vm9, %v1798_v26  ;;  %vm1560_vm7 = vmpackc.low %vm486_vm2, %vm485_vm1  ;;  %1593 = vmatpush.bf16.msk.msrb.mxu3 %vm1592_vm8, %v1798_v26  ;;  %vm554_vm1 = vcmp.eq.s32.totalorder %v1898_v17, %v2160_v42  ;;  %vm555_vm2 = vcmp.eq.s32.totalorder %v1901_v18, %v2160_v42 }
  0x30   :  { %1561 = vmatpush.bf16.msk.msrb.mxu2 %vm1560_vm7, %v1798_v26  ;;  %vm1536_vm13 = vmpackc.low %vm407_vm12, %vm406_vm10  ;;  %vm405_vm7 = vcmp.eq.s32.totalorder %v1992_v32, %v2082_v39  ;;  %vm482_vm10 = vcmp.eq.s32.totalorder %v1907_v20, %v2157_v41  ;;  %vm552_vm12 = vcmp.eq.s32.totalorder %v1904_v19, %v2160_v42 }
  0x31   :  { %1533 = vmatpush.bf16.msk.msrb.mxu1 %vm1532_vm3, %v1798_v26  ;;  %vm628_vm3 = vcmp.eq.s32.totalorder %v1895_v16, %v2182_v43  ;;  %vm1562_vm9 = vmpackc.low %vm484_vm14, %vm483_vm6  ;;  %vm623_vm14 = vcmp.eq.s32.totalorder %v1904_v19, %v2182_v43 }
  0x32   :  { %vm1624_vm15 = vmpackc.low %vm628_vm3, %vm627_vm11 }
  0x33   :  { %1625 = vmatpush.bf16.msk.msra.mxu0 %vm1624_vm15, %v1798_v26  ;;  %vm1594_vm8 = vmpackc.low %vm555_vm2, %vm554_vm1  ;;  %vm481_vm15 = vcmp.eq.s32.totalorder %v1904_v19, %v2157_v41  ;;  %vm624_vm1 = vcmp.eq.s32.totalorder %v1907_v20, %v2182_v43 }
  0x34   :  { %1563 = vmatpush.bf16.msk.msrb.mxu2 %vm1562_vm9, %v1798_v26  ;;  %1595 = vmatpush.bf16.msk.msrb.mxu3 %vm1594_vm8, %v1798_v26  ;;  %vm1626_vm11 = vmpackc.low %vm626_vm5, %vm625_vm4  ;;  %vm402_vm4 = vcmp.eq.s32.totalorder %v2021_v34, %v2082_v39  ;;  %vm403_vm5 = vcmp.eq.s32.totalorder %v2024_v35, %v2082_v39  ;;  %vm480_vm8 = vcmp.eq.s32.totalorder %v1931_v24, %v2157_v41 }
  0x35   :  { %1535 = vmatpush.bf16.msk.msrb.mxu1 %vm1534_vm0, %v1798_v26  ;;  %vm404_vm0 = vcmp.eq.s32.totalorder %v1989_v31, %v2082_v39  ;;  %vm1564_vm6 = vmpackc.low %vm482_vm10, %vm481_vm15  ;;  %vm621_vm10 = vcmp.eq.s32.totalorder %v1928_v23, %v2182_v43 }
  0x36   :  { %vm1538_vm3 = vmpackc.low %vm405_vm7, %vm404_vm0  ;;  %vm479_vm7 = vcmp.eq.s32.totalorder %v1928_v23, %v2157_v41 }
  0x37   :  { %1627 = vmatpush.bf16.msk.msra.mxu0 %vm1626_vm11, %v1798_v26  ;;  %vm1628_vm9 = vmpackc.low %vm624_vm1, %vm623_vm14  ;;  %vm550_vm11 = vcmp.eq.s32.totalorder %v1928_v23, %v2160_v42  ;;  %vm400_vm14 = vcmp.eq.s32.totalorder %v1880_v10, %v2082_v39  ;;  %vm401_vm1 = vcmp.eq.s32.totalorder %v2053_v37, %v2082_v39 }
  0x38   :  { %1565 = vmatpush.bf16.msk.msrb.mxu2 %vm1564_vm6, %v1798_v26  ;;  %vm1540_vm0 = vmpackc.low %vm403_vm5, %vm402_vm4  ;;  %vm478_vm4 = vcmp.eq.s32.totalorder %v1962_v29, %v2157_v41  ;;  %vm548_vm5 = vcmp.eq.s32.totalorder %v1959_v28, %v2160_v42 }
  0x39   :  { %1537 = vmatpush.bf16.msk.msrb.mxu1 %vm1536_vm13, %v1798_v26  ;;  %vm553_vm13 = vcmp.eq.s32.totalorder %v1907_v20, %v2160_v42  ;;  %vm1566_vm15 = vmpackc.low %vm480_vm8, %vm479_vm7  ;;  %vm619_vm8 = vcmp.eq.s32.totalorder %v1959_v28, %v2182_v43 }
  0x3a   :  { %vm1596_vm2 = vmpackc.low %vm553_vm13, %vm552_vm12  ;;  %vm622_vm12 = vcmp.eq.s32.totalorder %v1931_v24, %v2182_v43 }
  0x3b   :  { %1597 = vmatpush.bf16.msk.msrb.mxu3 %vm1596_vm2, %v1798_v26  ;;  %1629 = vmatpush.bf16.msk.msra.mxu0 %vm1628_vm9, %v1798_v26  ;;  %vm1630_vm6 = vmpackc.low %vm622_vm12, %vm621_vm10  ;;  %vm477_vm9 = vcmp.eq.s32.totalorder %v1959_v28, %v2157_v41  ;;  %vm476_vm10 = vcmp.eq.s32.totalorder %v1992_v32, %v2157_v41 }
  0x3c   :  { %1567 = vmatpush.bf16.msk.msrb.mxu2 %vm1566_vm15, %v1798_v26  ;;  %vm1542_vm2 = vmpackc.low %vm401_vm1, %vm400_vm14  ;;  %vm475_vm15 = vcmp.eq.s32.totalorder %v1989_v31, %v2157_v41  ;;  %vm617_vm14 = vcmp.eq.s32.totalorder %v1989_v31, %v2182_v43  ;;  %vm618_vm1 = vcmp.eq.s32.totalorder %v1992_v32, %v2182_v43 }
  0x3d   :  { %1539 = vmatpush.bf16.msk.msrb.mxu1 %vm1538_vm3, %v1798_v26  ;;  %vm551_vm3 = vcmp.eq.s32.totalorder %v1931_v24, %v2160_v42  ;;  %vm1568_vm7 = vmpackc.low %vm478_vm4, %vm477_vm9  ;;  %vm473_vm4 = vcmp.eq.s32.totalorder %v2021_v34, %v2157_v41 }
  0x3e   :  { %vm1598_vm13 = vmpackc.low %vm551_vm3, %vm550_vm11  ;;  %vm620_vm11 = vcmp.eq.s32.totalorder %v1962_v29, %v2182_v43 }
  0x3f   :  { %1599 = vmatpush.bf16.msk.msrb.mxu3 %vm1598_vm13, %v1798_v26  ;;  %1631 = vmatpush.bf16.msk.msra.mxu0 %vm1630_vm6, %v1798_v26  ;;  %vm1632_vm12 = vmpackc.low %vm620_vm11, %vm619_vm8  ;;  %vm546_vm13 = vcmp.eq.s32.totalorder %v1989_v31, %v2160_v42  ;;  %vm547_vm6 = vcmp.eq.s32.totalorder %v1992_v32, %v2160_v42  ;;  %vm545_vm8 = vcmp.eq.s32.totalorder %v2024_v35, %v2160_v42 }
  0x40   :  { %1569 = vmatpush.bf16.msk.msrb.mxu2 %vm1568_vm7, %v1798_v26  ;;  %vm1602_vm9 = vmpackc.low %vm547_vm6, %vm546_vm13  ;;  %vm544_vm7 = vcmp.eq.s32.totalorder %v2021_v34, %v2160_v42  ;;  %vm615_vm11 = vcmp.eq.s32.totalorder %v2021_v34, %v2182_v43  ;;  %vm472_vm13 = vcmp.eq.s32.totalorder %v2053_v37, %v2157_v41 }
  0x41   :  { %1541 = vmatpush.bf16.msk.msrb.mxu1 %vm1540_vm0, %v1798_v26  ;;  %vm549_vm0 = vcmp.eq.s32.totalorder %v1962_v29, %v2160_v42 }
  0x42   :  { %vm1600_vm3 = vmpackc.low %vm549_vm0, %vm548_vm5  ;;  %vm474_vm5 = vcmp.eq.s32.totalorder %v2024_v35, %v2157_v41 }
  0x43   :  { %1601 = vmatpush.bf16.msk.msrb.mxu3 %vm1600_vm3, %v1798_v26  ;;  %1633 = vmatpush.bf16.msk.msra.mxu0 %vm1632_vm12, %v1798_v26  ;;  %vm1634_vm0 = vmpackc.low %vm618_vm1, %vm617_vm14  ;;  %vm616_vm3 = vcmp.eq.s32.totalorder %v2024_v35, %v2182_v43  ;;  %vm471_vm12 = vcmp.eq.s32.totalorder %v1880_v10, %v2157_v41  ;;  %vm542_vm14 = vcmp.eq.s32.totalorder %v1880_v10, %v2160_v42 }
  0x44   :  { %vm1636_vm6 = vmpackc.low %vm616_vm3, %vm615_vm11  ;;  %vm543_vm1 = vcmp.eq.s32.totalorder %v2053_v37, %v2160_v42  ;;  %vm696_vm3 = vcmp.eq.s32.totalorder %v1898_v17, %v1793_v47 }
  0x45   :  { %1543 = vmatpush.bf16.msk.msrb.mxu1 %vm1542_vm2, %v1798_v26  ;;  %vm1570_vm2 = vmpackc.low %vm476_vm10, %vm475_vm15 }
  0x46   :  { %1571 = vmatpush.bf16.msk.msrb.mxu2 %vm1570_vm2, %v1798_v26  ;;  %vm1572_vm15 = vmpackc.low %vm474_vm5, %vm473_vm4  ;;  %vm613_vm2 = vcmp.eq.s32.totalorder %v1880_v10, %v2182_v43 }
  0x47   :  { %1603 = vmatpush.bf16.msk.msrb.mxu3 %vm1602_vm9, %v1798_v26  ;;  %1635 = vmatpush.bf16.msk.msra.mxu0 %vm1634_vm0, %v1798_v26  ;;  %vm1604_vm10 = vmpackc.low %vm545_vm8, %vm544_vm7  ;;  %vm614_vm9 = vcmp.eq.s32.totalorder %v2053_v37, %v2182_v43  ;;  %vm698_vm7 = vcmp.eq.s32.totalorder %v1892_v15, %v1793_v47  ;;  %vm699_vm8 = vcmp.eq.s32.totalorder %v1895_v16, %v1793_v47  ;;  %v1676_v15 = vld [vmem:[%s2485_s3 + $0x8] sm:$0xf0] }
  0x48   :  { %vm1574_vm4 = vmpackc.low %vm472_vm13, %vm471_vm12  ;;  %vm694_vm12 = vcmp.eq.s32.totalorder %v1904_v19, %v1793_v47  ;;  %vm695_vm13 = vcmp.eq.s32.totalorder %v1907_v20, %v1793_v47 }
  0x49   :  { %vm1606_vm5 = vmpackc.low %vm543_vm1, %vm542_vm14  ;;  %vm692_vm14 = vcmp.eq.s32.totalorder %v1928_v23, %v1793_v47  ;;  %vm693_vm1 = vcmp.eq.s32.totalorder %v1931_v24, %v1793_v47  ;;  %v1785_v23 = vld [vmem:[%s2485_s3 + $0x4] sm:$0xf0] }
  0x4a   :  { %1573 = vmatpush.bf16.msk.msrb.mxu2 %vm1572_vm15, %v1798_v26  ;;  %vm1638_vm0 = vmpackc.low %vm614_vm9, %vm613_vm2  ;;  %vm697_vm15 = vcmp.eq.s32.totalorder %v1901_v18, %v1793_v47  ;;  %vm690_vm9 = vcmp.eq.s32.totalorder %v1959_v28, %v1793_v47  ;;  %v1679_v18 = vor.u32 %v1784_v14, %v1676_v15  ;;  %v1675_v25 = vor.u32 %v1785_v23, %v1674_v22 }
  0x4b   :  { %1605 = vmatpush.bf16.msk.msrb.mxu3 %vm1604_vm10, %v1798_v26  ;;  %1637 = vmatpush.bf16.msk.msra.mxu0 %vm1636_vm6, %v1798_v26  ;;  %vm1656_vm11 = vmpackc.low %vm699_vm8, %vm698_vm7  ;;  %vm689_vm7 = vcmp.eq.s32.totalorder %v1992_v32, %v1793_v47  ;;  %v823_v28 = vperm.slane %v2363_v27, 0  ;;  %v885_v32 = vperm.slane %v2363_v27, 2  ;;  %v1799_v22 = vmov 0.0  }
  0x4c   :  { %vm1658_vm10 = vmpackc.low %vm697_vm15, %vm696_vm3  ;;  %vm687_vm3 = vcmp.eq.s32.totalorder %v2024_v35, %v1793_v47 }
  0x4d   :  { %vm1660_vm6 = vmpackc.low %vm695_vm13, %vm694_vm12  ;;  %vm685_vm12 = vcmp.eq.s32.totalorder %v2053_v37, %v1793_v47 }
  0x4e   :  { %1575 = vmatpush.bf16.msk.msrb.mxu2 %vm1574_vm4, %v1798_v26  ;;  %vm1662_vm2 = vmpackc.low %vm693_vm1, %vm692_vm14  ;;  %vm691_vm4 = vcmp.eq.s32.totalorder %v1962_v29, %v1793_v47  ;;  %v856_v29 = vperm.slane %v2363_v27, 1  ;;  %vm826_vm14 = vcmp.eq.s32.totalorder %v2021_v34, %v823_v28  ;;  %vm827_vm1 = vcmp.eq.s32.totalorder %v2024_v35, %v823_v28 }
  0x4f   :  { %1607 = vmatpush.bf16.msk.msrb.mxu3 %vm1606_vm5, %v1798_v26  ;;  %1639 = vmatpush.bf16.msk.msra.mxu0 %vm1638_vm0, %v1798_v26  ;;  %vm1664_vm5 = vmpackc.low %vm691_vm4, %vm690_vm9  ;;  %vm688_vm0 = vcmp.eq.s32.totalorder %v1989_v31, %v1793_v47  ;;  %v943_v31 = vperm.slane %v2363_v27, 4 }
  0x50   :  { %vm1666_vm8 = vmpackc.low %vm689_vm7, %vm688_vm0  ;;  %vm860_vm9 = vcmp.eq.s32.totalorder %v2024_v35, %v856_v29  ;;  %vm918_vm0 = vcmp.eq.s32.totalorder %v2024_v35, %v914_v30 }
  0x51   :  { %vm1685_vm4 = vmpackc.low %vm827_vm1, %vm826_vm14  ;;  %vm946_vm7 = vcmp.eq.s32.totalorder %v2021_v34, %v943_v31  ;;  %vm858_vm14 = vcmp.eq.s32.totalorder %v2053_v37, %v856_v29 }
  0x75   :  { %v51_v44 = vpop.permute.xlu0 %50 }
  0x78   :  { %v770_v39 = vpop.permute.xlu1 %769 }
  0x7d   :  { %v56_v48 = vpop.permute.xlu0 %55 }
  0x86   :  { %v88_v45 = vpop.f32.mrf.mxu0 }
  0x87   :  { %v89_v46 = vadd.f32 %v88_v45, %v51_v44 }
  0x89   :  { %v93_v51 = vmax.f32 %v89_v46, 0.0 }
  0x8c   :  { %v775_v43 = vpop.permute.xlu1 %774 }
  0x8e   :  { %v90_v49 = vpop.f32.mrf.mxu0 }
  0x8f   :  { %v91_v50 = vadd.f32 %v90_v49, %v56_v48 }
  0x91   :  { %v94_v52 = vmax.f32 %v91_v50, 0.0 }
  0x93   :  { %v95_v53 = vpack.c.bf16 %v94_v52, %v93_v51 }
  0x95   :  { %180 = vmatmul.bf16.vlgmr.msra.gmra.mxu1 %v95_v53  ;;  %251 = vmatmul.bf16.vlgmr.msra.gmra.mxu2 %v95_v53 }
  0x96   :  { %322 = vmatmul.bf16.vlgmr.msra.gmra.mxu3 %v95_v53  ;;  %393 = vmatmul.bf16.vlgmr.msrb.gmra.mxu0 %v95_v53 }
  0x97   :  { %1657 = vmatpush.bf16.msk.msra.mxu1 %vm1656_vm11, %v1798_v26  ;;  %vm686_vm11 = vcmp.eq.s32.totalorder %v2021_v34, %v1793_v47  ;;  %1686 = vmatpush.bf16.msk.msrb.mxu0 %vm1685_vm4, %v1798_v26  ;;  %vm915_vm4 = vcmp.eq.s32.totalorder %v1880_v10, %v914_v30 }
  0x98   :  { %vm1668_vm15 = vmpackc.low %vm687_vm3, %vm686_vm11 }
  0x9b   :  { %1659 = vmatpush.bf16.msk.msra.mxu1 %vm1658_vm10, %v1798_v26  ;;  %vm684_vm10 = vcmp.eq.s32.totalorder %v1880_v10, %v1793_v47  ;;  %v1001_v47 = vperm.slane %v2363_v27, 6 }
  0x9c   :  { %vm1670_vm13 = vmpackc.low %vm685_vm12, %vm684_vm10  ;;  %vm825_vm10 = vcmp.eq.s32.totalorder %v2053_v37, %v823_v28 }
  0x9f   :  { %1661 = vmatpush.bf16.msk.msra.mxu1 %vm1660_vm6, %v1798_v26  ;;  %vm2494_vm6 = vcmask 130048  }
  0xa3   :  { %1663 = vmatpush.bf16.msk.msra.mxu1 %vm1662_vm2, %v1798_v26  ;;  %vm859_vm2 = vcmp.eq.s32.totalorder %v2021_v34, %v856_v29 }
  0xa4   :  { %vm1694_vm11 = vmpackc.low %vm860_vm9, %vm859_vm2  ;;  %vm916_vm2 = vcmp.eq.s32.totalorder %v2053_v37, %v914_v30  ;;  %vm944_vm9 = vcmp.eq.s32.totalorder %v1880_v10, %v943_v31 }
  0xa5   :  { %464 = vmatmul.bf16.vlgmr.msrb.gmra.mxu1 %v95_v53  ;;  %535 = vmatmul.bf16.vlgmr.msrb.gmra.mxu2 %v95_v53 }
  0xa6   :  { %606 = vmatmul.bf16.vlgmr.msrb.gmra.mxu3 %v95_v53  ;;  %677 = vmatmul.bf16.vlgmr.msra.gmra.mxu0 %v95_v53 }
  0xa7   :  { %1665 = vmatpush.bf16.msk.msra.mxu1 %vm1664_vm5, %v1798_v26  ;;  %vm917_vm5 = vcmp.eq.s32.totalorder %v2021_v34, %v914_v30 }
  0xa8   :  { %vm1712_vm3 = vmpackc.low %vm918_vm0, %vm917_vm5  ;;  %vm945_vm5 = vcmp.eq.s32.totalorder %v2053_v37, %v943_v31 }
  0xab   :  { %1667 = vmatpush.bf16.msk.msra.mxu1 %vm1666_vm8, %v1798_v26  ;;  %vm947_vm8 = vcmp.eq.s32.totalorder %v2024_v35, %v943_v31 }
  0xac   :  { %vm1721_vm12 = vmpackc.low %vm947_vm8, %vm946_vm7 }
  0xad   :  { %vm1714_vm7 = vmpackc.low %vm916_vm2, %vm915_vm4  ;;  %vm1034_vm4 = vcmp.eq.s32.totalorder %v2024_v35, %v1030_v36 }
  0xae   :  { %vm1723_vm8 = vmpackc.low %vm945_vm5, %vm944_vm9  ;;  %vm1062_vm9 = vcmp.eq.s32.totalorder %v2021_v34, %v1794_v38  ;;  %vm1063_vm5 = vcmp.eq.s32.totalorder %v2024_v35, %v1794_v38 }
  0xaf   :  { %1669 = vmatpush.bf16.msk.msra.mxu1 %vm1668_vm15, %v1798_v26  ;;  %vm824_vm15 = vcmp.eq.s32.totalorder %v1880_v10, %v823_v28 }
  0xb0   :  { %vm1687_vm1 = vmpackc.low %vm825_vm10, %vm824_vm15  ;;  %vm886_vm15 = vcmp.eq.s32.totalorder %v1880_v10, %v885_v32  ;;  %vm887_vm10 = vcmp.eq.s32.totalorder %v2053_v37, %v885_v32 }
  0xb1   :  { %1688 = vmatpush.bf16.msk.msrb.mxu0 %vm1687_vm1, %v1798_v26  ;;  %vm1033_vm1 = vcmp.eq.s32.totalorder %v2021_v34, %v1030_v36  ;;  %vm1705_vm2 = vmpackc.low %vm887_vm10, %vm886_vm15  ;;  %vm1060_vm15 = vcmp.eq.s32.totalorder %v1880_v10, %v1794_v38  ;;  %vm1061_vm10 = vcmp.eq.s32.totalorder %v2053_v37, %v1794_v38 }
  0xb3   :  { %1671 = vmatpush.bf16.msk.msra.mxu1 %vm1670_vm13, %v1798_v26  ;;  %vm857_vm13 = vcmp.eq.s32.totalorder %v1880_v10, %v856_v29 }
  0xb4   :  { %vm1696_vm0 = vmpackc.low %vm858_vm14, %vm857_vm13  ;;  %vm975_vm13 = vcmp.eq.s32.totalorder %v2021_v34, %v972_v33  ;;  %vm976_vm14 = vcmp.eq.s32.totalorder %v2024_v35, %v972_v33 }
  0xb6   :  { %748 = vmatmul.bf16.vlgmr.msra.gmra.mxu1 %v95_v53 }
  0xb7   :  { %1713 = vmatpush.bf16.msk.msrb.mxu1 %vm1712_vm3, %v1798_v26  ;;  %vm889_vm3 = vcmp.eq.s32.totalorder %v2024_v35, %v885_v32 }
  0xbb   :  { %1715 = vmatpush.bf16.msk.msrb.mxu1 %vm1714_vm7, %v1798_v26  ;;  %vm973_vm7 = vcmp.eq.s32.totalorder %v1880_v10, %v972_v33 }
 0x112   :  { %v181_v54 = vpop.f32.mrf.mxu1 }
 0x113   :  { %v394_v55 = vpop.f32.mrf.mxu0 }
 0x118   :  { %v252_v56 = vpop.f32.mrf.mxu2 }
 0x119   :  { %v323_v57 = vpop.f32.mrf.mxu3 }
 0x11a   :  { %v183_v58 = vpop.f32.mrf.mxu1 }
 0x11b   :  { %v396_v59 = vpop.f32.mrf.mxu0  ;;  %v754_v24 = vpack.c.bf16 %v183_v58, %v181_v54 }
 0x11c   :  { %v757_v19 = vpack.c.bf16 %v396_v59, %v394_v55 }
 0x120   :  { %v254_v60 = vpop.f32.mrf.mxu2 }
 0x121   :  { %v325_v61 = vpop.f32.mrf.mxu3  ;;  %v755_v21 = vpack.c.bf16 %v254_v60, %v252_v56 }
 0x122   :  { %v465_v62 = vpop.f32.mrf.mxu1  ;;  %v756_v20 = vpack.c.bf16 %v325_v61, %v323_v57 }
 0x123   :  { %v678_v63 = vpop.f32.mrf.mxu0 }
 0x128   :  { %v536_v0 = vpop.f32.mrf.mxu2 }
 0x129   :  { %v607_v1 = vpop.f32.mrf.mxu3 }
 0x12a   :  { %v467_v2 = vpop.f32.mrf.mxu1 }
 0x12b   :  { %v680_v3 = vpop.f32.mrf.mxu0  ;;  %v758_v13 = vpack.c.bf16 %v467_v2, %v465_v62 }
 0x12c   :  { %v761_v4 = vpack.c.bf16 %v680_v3, %v678_v63  ;;  %v1097_v3 = vld [vmem:[%s2488_s6] sm:$0xff] }
 0x12e   :  { %790 = vmatpush.bf16.msra.mxu2 %v761_v4  ;;  %v1106_v4 = vunpack.c.h.b16 %v1097_v3 }
 0x130   :  { %v538_v8 = vpop.f32.mrf.mxu2  ;;  %v1108_v5 = vpack.c.b16 %v1106_v4, %v1106_v4 }
 0x131   :  { %v609_v6 = vpop.f32.mrf.mxu3  ;;  %v759_v12 = vpack.c.bf16 %v538_v8, %v536_v0 }
 0x132   :  { %v760_v7 = vpack.c.bf16 %v609_v6, %v607_v1  ;;  %v1098_v6 = vld [vmem:[%s2489_s7] sm:$0xff] }
 0x133   :  { %v749_v9 = vpop.f32.mrf.mxu1  ;;  %1101 = vperm.xlu2 %1792, %v1098_v6  }
 0x134   :  { %791 = vmatpush.bf16.msra.mxu2 %v760_v7 }
 0x138   :  { %792 = vmatpush.bf16.msra.mxu2 %v759_v12 }
 0x13b   :  { %v751_v16 = vpop.f32.mrf.mxu1  ;;  %1345 = vperm.xlu2 %1792, %v1342_v11  }
 0x13c   :  { %v762_v17 = vpack.c.bf16 %v751_v16, %v749_v9  ;;  %793 = vmatpush.bf16.msra.mxu2 %v758_v13 }
 0x13e   :  { %811 = vmatpush.bf16.msra.mxu3 %v762_v17  ;;  %v1105_v17 = vunpack.c.l.b16 %v1097_v3 }
 0x140   :  { %794 = vmatpush.bf16.msra.mxu2 %v757_v19  ;;  %v1107_v19 = vpack.c.b16 %v1105_v17, %v1105_v17 }
 0x141   :  { %1680 = vmatmul.msk.bf16.vlgmr.msra.gmra.mxu3 %vm2494_vm6, %v1679_v18  ;;  %vm1032_vm6 = vcmp.eq.s32.totalorder %v2053_v37, %v1030_v36 }
 0x142   :  { %1695 = vmatpush.bf16.msk.msrb.mxu3 %vm1694_vm11, %v1798_v26  ;;  %vm888_vm11 = vcmp.eq.s32.totalorder %v2021_v34, %v885_v32 }
 0x144   :  { %795 = vmatpush.bf16.msra.mxu2 %v756_v20  ;;  %v1141_v20 = vld [vmem:[%s2487_s11] sm:$0xff] }
 0x145   :  { %v1143_v28 = vperm.slane %v1141_v20, 0  ;;  %v1189_v29 = vperm.slane %v1141_v20, 2  ;;  %v1252_v30 = vperm.slane %v1141_v20, 5 }
 0x146   :  { %1697 = vmatpush.bf16.msk.msrb.mxu3 %vm1696_vm0, %v1798_v26  ;;  %vm1730_vm0 = vmpackc.low %vm976_vm14, %vm975_vm13 }
 0x148   :  { %796 = vmatpush.bf16.msra.mxu2 %v755_v21  ;;  %v1168_v21 = vperm.slane %v1141_v20, 1 }
 0x14a   :  { %1731 = vmatpush.bf16.msk.msra.mxu3 %vm1730_vm0, %v1798_v26  ;;  %vm1003_vm0 = vcmp.eq.s32.totalorder %v2053_v37, %v1001_v47 }
 0x14c   :  { %797 = vmatpush.bf16.msra.mxu2 %v754_v24 }
 0x14f   :  { %798 = vmatmul.bf16.vlgmr.msra.gmra.mxu2 %v1675_v25 }
 0x150   :  { %1722 = vmatpush.bf16.msk.msrb.mxu2 %vm1721_vm12, %v1798_v26  ;;  %vm1703_vm12 = vmpackc.low %vm889_vm3, %vm888_vm11  ;;  %vm1031_vm3 = vcmp.eq.s32.totalorder %v1880_v10, %v1030_v36 }
 0x151   :  { %1704 = vmatpush.bf16.msk.msra.mxu0 %vm1703_vm12, %v1798_v26  ;;  %vm1748_vm11 = vmpackc.low %vm1034_vm4, %vm1033_vm1  ;;  %vm1005_vm4 = vcmp.eq.s32.totalorder %v2024_v35, %v1001_v47 }
 0x152   :  { %1749 = vmatpush.bf16.msk.msra.mxu1 %vm1748_vm11, %v1798_v26  ;;  %vm1757_vm12 = vmpackc.low %vm1063_vm5, %vm1062_vm9  ;;  %vm1002_vm5 = vcmp.eq.s32.totalorder %v1880_v10, %v1001_v47  ;;  %vm1169_vm11 = vcmp.eq.s32.totalorder %v1880_v10, %v1168_v21 }
 0x153   :  { %vm1750_vm14 = vmpackc.low %vm1032_vm6, %vm1031_vm3  ;;  %vm1004_vm6 = vcmp.eq.s32.totalorder %v2021_v34, %v1001_v47  ;;  %v1765_v23 = vsel %vm1169_vm11, 1.0, %v1799_v22  ;;  %vm2508_vm3 = vcmask 1043456   ;;  %vm1148_vm11 = vcmask 64512  }
 0x154   :  { %1724 = vmatpush.bf16.msk.msrb.mxu2 %vm1723_vm8, %v1798_v26  ;;  %vm974_vm8 = vcmp.eq.s32.totalorder %v2053_v37, %v972_v33  ;;  %vm1759_vm1 = vmpackc.low %vm1061_vm10, %vm1060_vm15  ;;  %v1172_v24 = vpack.c.bf16 %v1765_v23, %v1765_v23  ;;  %vm1190_vm15 = vcmp.eq.s32.totalorder %v1880_v10, %v1189_v29  ;;  %vm1253_vm10 = vcmp.eq.s32.totalorder %v1880_v10, %v1252_v30 }
 0x155   :  { %1706 = vmatpush.bf16.msk.msra.mxu0 %vm1705_vm2, %v1798_v26  ;;  %vm1732_vm13 = vmpackc.low %vm974_vm8, %vm973_vm7  ;;  %vm838_vm2 = vcmask 261120   ;;  %vm2507_vm8 = vcmask 130048   ;;  %v1767_v33 = vsel %vm1190_vm15, 1.0, %v1799_v22  ;;  %v1773_v36 = vsel %vm1253_vm10, 1.0, %v1799_v22 }
 0x156   :  { %1733 = vmatpush.bf16.msk.msra.mxu3 %vm1732_vm13, %v1798_v26  ;;  %1751 = vmatpush.bf16.msk.msra.mxu1 %vm1750_vm14, %v1798_v26  ;;  %vm1739_vm9 = vmpackc.low %vm1005_vm4, %vm1004_vm6  ;;  %v1174_v25 = vsel %vm2508_vm3, %v1172_v24, 0  ;;  %vm1348_vm10 = vcmask 588800  }
 0x157   :  { %vm1741_vm7 = vmpackc.low %vm1003_vm0, %vm1002_vm5 }
 0x158   :  { %1758 = vmatpush.bf16.msk.msra.mxu2 %vm1757_vm12, %v1798_v26  ;;  %vm1144_vm12 = vcmp.eq.s32.totalorder %v1880_v10, %v1143_v28  ;;  %vm2509_vm13 = vmmov %vm2508_vm3  ;;  %v1341_v28 = vld [vmem:[%s2491_s9] sm:$0xf] }
 0x159   :  { %v1763_v32 = vsel %vm1144_vm12, 1.0, %v1799_v22  ;;  %vm2510_vm14 = vmmov %vm2508_vm3 }
 0x15a   :  { %v1147_v38 = vpack.c.bf16 %v1763_v32, %v1763_v32 }
 0x15c   :  { %1760 = vmatpush.bf16.msk.msra.mxu2 %vm1759_vm1, %v1798_v26  ;;  %vm2511_vm1 = vmmov %vm2508_vm3 }
 0x15d   :  { %vm2513_vm5 = vmmov %vm2511_vm1 }
 0x15e   :  { %vm2514_vm0 = vmmov %vm2511_vm1 }
 0x15f   :  { %vm2515_vm3 = vmmov %vm2514_vm0 }
 0x160   :  { %vm2516_vm12 = vmmov %vm2514_vm0 }
 0x161   :  { %vm2517_vm15 = vmmov %vm2514_vm0 }
 0x1c4   :  { %v813_v40 = vpop.f32.mrf.mxu3 }
 0x1cc   :  { %v815_v48 = vpop.f32.mrf.mxu3 }
 0x1d2   :  { %v799_v41 = vpop.f32.mrf.mxu2 }
 0x1d3   :  { %v800_v42 = vadd.f32 %v799_v41, %v770_v39  ;;  %v1193_v39 = vpack.c.bf16 %v1767_v33, %v1767_v33  ;;  %v1153_v41 = vsel %vm2509_vm13, %v1147_v38, 0  ;;  %vm1369_vm13 = vcmask 15360  }
 0x1d5   :  { %v814_v45 = vadd.f32 %v813_v40, %v800_v42  ;;  %v1256_v40 = vpack.c.bf16 %v1773_v36, %v1773_v36  ;;  %v1195_v42 = vsel %vm2510_vm14, %v1193_v39, 0 }
 0x1d7   :  { %v818_v50 = vmax.f32 %v814_v45, 0.0  ;;  %v1210_v45 = vperm.slane %v1141_v20, 3 }
 0x1d9   :  { %vm1211_vm4 = vcmp.eq.s32.totalorder %v1880_v10, %v1210_v45 }
 0x1da   :  { %v801_v44 = vpop.f32.mrf.mxu2 }
 0x1db   :  { %v802_v46 = vadd.f32 %v801_v44, %v775_v43  ;;  %v1258_v43 = vsel %vm2511_vm1, %v1256_v40, 0  ;;  %v1231_v44 = vperm.slane %v1141_v20, 4 }
 0x1dd   :  { %v816_v49 = vadd.f32 %v815_v48, %v802_v46  ;;  %v1273_v46 = vperm.slane %v1141_v20, 6  ;;  %vm1232_vm6 = vcmp.eq.s32.totalorder %v1880_v10, %v1231_v44  ;;  %v1769_v48 = vsel %vm1211_vm4, 1.0, %v1799_v22 }
 0x1de   :  { %v1771_v47 = vsel %vm1232_vm6, 1.0, %v1799_v22 }
 0x1df   :  { %v819_v51 = vmax.f32 %v816_v49, 0.0 }
 0x1e1   :  { %v820_v52 = vpack.c.bf16 %v819_v51, %v818_v50  ;;  %v1235_v50 = vpack.c.bf16 %v1771_v47, %v1771_v47  ;;  %v1214_v51 = vpack.c.bf16 %v1769_v48, %v1769_v48 }
 0x1e3   :  { %1689 = vmatmul.msk.bf16.vlgmr.msrb.gmra.mxu0 %vm838_vm2, %v820_v52  ;;  %1698 = vmatmul.msk.bf16.vlgmr.msrb.gmra.mxu3 %vm838_vm2, %v820_v52 }
 0x1e4   :  { %1716 = vmatmul.msk.bf16.vlgmr.msrb.gmra.mxu1 %vm838_vm2, %v820_v52  ;;  %1725 = vmatmul.msk.bf16.vlgmr.msrb.gmra.mxu2 %vm838_vm2, %v820_v52 }
 0x1e5   :  { %1740 = vmatpush.bf16.msk.msrb.mxu0 %vm1739_vm9, %v1798_v26  ;;  %1183 = vmatpush.bf16.msrb.mxu2 %v1174_v25  ;;  %vm2512_vm9 = vmmov %vm2511_vm1 }
 0x1e6   :  { %1162 = vmatpush.bf16.msrb.mxu1 %v1153_v41 }
 0x1e9   :  { %1742 = vmatpush.bf16.msk.msrb.mxu0 %vm1741_vm7, %v1798_v26 }
 0x1f3   :  { %1707 = vmatmul.msk.bf16.vlgmr.msra.gmra.mxu0 %vm838_vm2, %v820_v52  ;;  %1734 = vmatmul.msk.bf16.vlgmr.msra.gmra.mxu3 %vm838_vm2, %v820_v52 }
 0x1f4   :  { %1752 = vmatmul.msk.bf16.vlgmr.msra.gmra.mxu1 %vm838_vm2, %v820_v52  ;;  %1761 = vmatmul.msk.bf16.vlgmr.msra.gmra.mxu2 %vm838_vm2, %v820_v52 }
 0x203   :  { %1743 = vmatmul.msk.bf16.vlgmr.msrb.gmra.mxu0 %vm838_vm2, %v820_v52  ;;  %vm1274_vm2 = vcmp.eq.s32.totalorder %v1880_v10, %v1273_v46 }
 0x204   :  { %v1775_v49 = vsel %vm1274_vm2, 1.0, %v1799_v22 }
 0x205   :  { %v1277_v52 = vpack.c.bf16 %v1775_v49, %v1775_v49 }
 0x260   :  { %v851_v34 = vpop.f32.mrf.mxu0 }
 0x261   :  { %v938_v35 = vpop.f32.mrf.mxu1 }
 0x266   :  { %v880_v55 = vpop.f32.mrf.mxu3 }
 0x267   :  { %v967_v37 = vpop.f32.mrf.mxu2 }
 0x268   :  { %v853_v53 = vpop.f32.mrf.mxu0 }
 0x269   :  { %v940_v54 = vpop.f32.mrf.mxu1  ;;  %v1088_v18 = vpack.c.bf16 %v853_v53, %v851_v34  ;;  %v1237_v34 = vsel %vm2512_vm9, %v1235_v50, 0  ;;  %v1795_v53 = vld [vmem:[%s2487_s11 + $0x8] ss:$0 sm:$0xff] }
 0x26a   :  { %v1091_v14 = vpack.c.bf16 %v940_v54, %v938_v35  ;;  %v1216_v35 = vsel %vm2513_vm5, %v1214_v51, 0  ;;  %1246 = vmatpush.bf16.msra.mxu2 %v1237_v34  ;;  %v1294_v54 = vperm.slane %v1141_v20, 7  ;;  %vm1316_vm7 = vcmp.eq.s32.totalorder %v1880_v10, %v1795_v53 }
 0x26b   :  { %1225 = vmatpush.bf16.msra.mxu1 %v1216_v35 }
 0x26e   :  { %v882_v26 = vpop.f32.mrf.mxu3 }
 0x26f   :  { %v969_v56 = vpop.f32.mrf.mxu2  ;;  %v1089_v16 = vpack.c.bf16 %v882_v26, %v880_v55  ;;  %v1102_v55 = vpop.permute.xlu2 %1101 }
 0x270   :  { %v909_v57 = vpop.f32.mrf.mxu0  ;;  %v1092_v13 = vpack.c.bf16 %v969_v56, %v967_v37  ;;  %v1279_v37 = vsel %vm2514_vm0, %v1277_v52, 0 }
 0x271   :  { %v1054_v58 = vpop.f32.mrf.mxu1 }
 0x276   :  { %v996_v0 = vpop.f32.mrf.mxu3 }
 0x277   :  { %v1083_v59 = vpop.f32.mrf.mxu2  ;;  %v1346_v29 = vpop.permute.xlu2 %1345 }
 0x278   :  { %v911_v60 = vpop.f32.mrf.mxu0 }
 0x279   :  { %v1056_v61 = vpop.f32.mrf.mxu1  ;;  %v1090_v15 = vpack.c.bf16 %v911_v60, %v909_v57 }
 0x27a   :  { %v1095_v62 = vpack.c.bf16 %v1056_v61, %v1054_v58  ;;  %v1779_v58 = vsel %vm1316_vm7, 1.0, %v1799_v22 }
 0x27b   :  { %v1319_v60 = vpack.c.bf16 %v1779_v58, %v1779_v58 }
 0x27c   :  { %1113 = vmatpush.bf16.msrb.mxu3 %v1095_v62 }
 0x27e   :  { %v998_v9 = vpop.f32.mrf.mxu3 }
 0x27f   :  { %v1085_v63 = vpop.f32.mrf.mxu2  ;;  %v1093_v12 = vpack.c.bf16 %v998_v9, %v996_v0 }
 0x280   :  { %v1096_v1 = vpack.c.bf16 %v1085_v63, %v1083_v59  ;;  %v1025_v2 = vpop.f32.mrf.mxu0 }
 0x282   :  { %1133 = vmatpush.bf16.msra.mxu0 %v1096_v1  ;;  %v1321_v1 = vsel %vm2515_vm3, %v1319_v60, 0 }
 0x285   :  { %1762 = vmatmul.msk.bf16.vlgmr.msra.gmra.mxu0 %vm2507_vm8, %v1108_v5  ;;  %vm1295_vm8 = vcmp.eq.s32.totalorder %v1880_v10, %v1294_v54 }
 0x286   :  { %1204 = vmatpush.bf16.msrb.mxu0 %v1195_v42  ;;  %v1777_v26 = vsel %vm1295_vm8, 1.0, %v1799_v22 }
 0x287   :  { %v1298_v61 = vpack.c.bf16 %v1777_v26, %v1777_v26 }
 0x288   :  { %v1027_v7 = vpop.f32.mrf.mxu0 }
 0x289   :  { %v1094_v8 = vpack.c.bf16 %v1027_v7, %v1025_v2  ;;  %v1300_v2 = vsel %vm2516_vm12, %v1298_v61, 0 }
 0x28a   :  { %1288 = vmatpush.bf16.msra.mxu0 %v1279_v37 }
 0x28b   :  { %1114 = vmatpush.bf16.msrb.mxu3 %v1094_v8 }
 0x28f   :  { %1115 = vmatpush.bf16.msrb.mxu3 %v1093_v12 }
 0x293   :  { %1116 = vmatpush.bf16.msrb.mxu3 %v1092_v13 }
 0x297   :  { %1117 = vmatpush.bf16.msrb.mxu3 %v1091_v14 }
 0x29b   :  { %1118 = vmatpush.bf16.msrb.mxu3 %v1090_v15 }
 0x29f   :  { %1119 = vmatpush.bf16.msrb.mxu3 %v1089_v16 }
 0x2a3   :  { %1120 = vmatpush.bf16.msrb.mxu3 %v1088_v18 }
 0x2a6   :  { %1121 = vmatmul.bf16.vlgmr.msrb.gmra.mxu3 %v1107_v19 }
 0x2a7   :  { %1267 = vmatpush.bf16.msra.mxu3 %v1258_v43 }
 0x302   :  { %v1135_v27 = vpop.f32.mrf.mxu0 }
 0x30a   :  { %v1137_v31 = vpop.f32.mrf.mxu0 }
 0x329   :  { %v1122_v56 = vpop.f32.mrf.mxu3 }
 0x32a   :  { %v1123_v57 = vadd.f32 %v1122_v56, %v1102_v55 }
 0x32c   :  { %v1136_v59 = vadd.f32 %v1135_v27, %v1123_v57 }
 0x32e   :  { %v1139_v62 = vmax.f32 %v1136_v59, 0.0 }
 0x330   :  { %v1140_v63 = vpack.c.bf16 %v1139_v62, %v1139_v62 }
 0x331   :  { %v1124_v0 = vpop.f32.mrf.mxu3 }
 0x332   :  { %1764 = vmatmul.msk.bf16.vlgmr.msrb.gmra.mxu1 %vm1148_vm11, %v1140_v63  ;;  %1766 = vmatmul.msk.bf16.vlgmr.msrb.gmra.mxu2 %vm1148_vm11, %v1140_v63 }
 0x333   :  { %1768 = vmatmul.msk.bf16.vlgmr.msrb.gmra.mxu0 %vm1148_vm11, %v1140_v63  ;;  %1774 = vmatmul.msk.bf16.vlgmr.msra.gmra.mxu3 %vm1148_vm11, %v1140_v63 }
 0x334   :  { %1330 = vmatpush.bf16.msrb.mxu2 %v1321_v1  ;;  %1309 = vmatpush.bf16.msrb.mxu1 %v1300_v2 }
 0x342   :  { %1770 = vmatmul.msk.bf16.vlgmr.msra.gmra.mxu1 %vm1148_vm11, %v1140_v63  ;;  %1772 = vmatmul.msk.bf16.vlgmr.msra.gmra.mxu2 %vm1148_vm11, %v1140_v63 }
 0x343   :  { %1776 = vmatmul.msk.bf16.vlgmr.msra.gmra.mxu0 %vm1148_vm11, %v1140_v63 }
 0x352   :  { %1778 = vmatmul.msk.bf16.vlgmr.msrb.gmra.mxu1 %vm1148_vm11, %v1140_v63  ;;  %1780 = vmatmul.msk.bf16.vlgmr.msrb.gmra.mxu2 %vm1148_vm11, %v1140_v63 }
 0x3af   :  { %v1164_v10 = vpop.f32.mrf.mxu1 }
 0x3b0   :  { %v1206_v3 = vpop.f32.mrf.mxu0 }
 0x3b5   :  { %v1185_v4 = vpop.f32.mrf.mxu2 }
 0x3b6   :  { %v1269_v5 = vpop.f32.mrf.mxu3  ;;  %v1336_v27 = vpack.c.bf16 %v1185_v4, %v1164_v10 }
 0x3b7   :  { %v1166_v6 = vpop.f32.mrf.mxu1 }
 0x3b8   :  { %v1208_v7 = vpop.f32.mrf.mxu0 }
 0x3bd   :  { %v1187_v8 = vpop.f32.mrf.mxu2 }
 0x3be   :  { %v1271_v9 = vpop.f32.mrf.mxu3 }
 0x3bf   :  { %v1227_v11 = vpop.f32.mrf.mxu1 }
 0x3c0   :  { %v1290_v12 = vpop.f32.mrf.mxu0  ;;  %v1337_v25 = vpack.c.bf16 %v1227_v11, %v1206_v3 }
 0x3c5   :  { %v1248_v13 = vpop.f32.mrf.mxu2 }
 0x3c6   :  { %v1338_v24 = vpack.c.bf16 %v1269_v5, %v1248_v13 }
 0x3c7   :  { %v1229_v14 = vpop.f32.mrf.mxu1 }
 0x3c8   :  { %v1292_v15 = vpop.f32.mrf.mxu0 }
 0x3cd   :  { %v1250_v16 = vpop.f32.mrf.mxu2 }
 0x3cf   :  { %v1311_v17 = vpop.f32.mrf.mxu1 }
 0x3d0   :  { %v1339_v22 = vpack.c.bf16 %v1311_v17, %v1290_v12 }
 0x3d5   :  { %v1332_v18 = vpop.f32.mrf.mxu2 }
 0x3d6   :  { %v1340_v19 = vpack.c.bf16 %v1332_v18, %v1332_v18 }
 0x3d7   :  { %v1313_v20 = vpop.f32.mrf.mxu1 }
 0x3d8   :  { %v1353_v21 = vsel %vm2517_vm15, %v1340_v19, 0 }
 0x3d9   :  { %1358 = vmatpush.bf16.msrb.mxu3 %v1353_v21 }
 0x3dd   :  { %v1334_v23 = vpop.f32.mrf.mxu2  ;;  %1359 = vmatpush.bf16.msrb.mxu3 %v1339_v22 }
 0x3e1   :  { %1360 = vmatpush.bf16.msrb.mxu3 %v1338_v24 }
 0x3e5   :  { %1361 = vmatpush.bf16.msrb.mxu3 %v1337_v25 }
 0x3e9   :  { %1362 = vmatpush.bf16.msrb.mxu3 %v1336_v27 }
 0x3ec   :  { %1781 = vmatmul.msk.bf16.vlgmr.msrb.gmra.mxu3 %vm1348_vm10, %v1341_v28 }
 0x46f   :  { %v1364_v30 = vpop.f32.mrf.mxu3 }
 0x470   :  { %v1365_v31 = vadd.f32 %v1364_v30, %v1346_v29 }
 0x472   :  { %v1368_v32 = vmax.f32 %v1365_v31, 0.0 }
 0x474   :  { %1370 = vst.msk [vmem:[%s2492_s12] sm:$0xff] %vm1369_vm13, %v1368_v32 }
 0x477   :  { %v1366_v33 = vpop.f32.mrf.mxu3 }

</bundles_post_ra>
